<compile_context>
chip_gen: v6e
topology: v6e:2x2x1
jax: 0.10.0
libtpu: 0.0.40
codegen_flags: <defaults>
</compile_context>

<pallas_src>
import functools

import jax
import jax.numpy as jnp
from jax import lax
from jax.experimental import pallas as pl
from jax.experimental.pallas import tpu as pltpu


def _round_up(x, m):
    return ((x + m - 1) // m) * m


def _pad_gates_last(m, h, h_pad):
    """(..., 3h) -> (..., 3*h_pad) with each gate zero-padded to a lane-aligned chunk."""
    parts = []
    for k in range(3):
        g = m[..., k * h:(k + 1) * h]
        pad = [(0, 0)] * (m.ndim - 1) + [(0, h_pad - h)]
        parts.append(jnp.pad(g, pad))
    return jnp.concatenate(parts, axis=-1)


def _gru_recurrent_kernel(gi_ref, whh_ref, bhh_ref, out_ref, h_scratch,
                          *, seq_len, t_blk):
    """grid = (batch_blocks, time_chunks); one grid step runs t_blk GRU steps."""
    c = pl.program_id(1)

    @pl.when(c == 0)
    def _():
        h_scratch[...] = jnp.zeros_like(h_scratch)      # h_0 = zeros, as in the module

    whh = whh_ref[...]          # (H_pad, 3*H_pad) resident recurrent weights
    bhh = bhh_ref[...]          # (1, 3*H_pad) f32
    hp = h_scratch.shape[-1]    # H_pad (multiple of 128 -> lane-aligned gate slices)

    def step(j, h_prev):
        gi_t = gi_ref[j].astype(jnp.float32)                     # (B_blk, 3*H_pad)
        gh = jnp.dot(h_prev.astype(whh.dtype), whh,
                     preferred_element_type=jnp.float32) + bhh
        # torch GRU gate order: r, z, n ; elementwise math kept in f32 (v5e-safe)
        r = jax.nn.sigmoid(gi_t[:, 0 * hp:1 * hp] + gh[:, 0 * hp:1 * hp])
        z = jax.nn.sigmoid(gi_t[:, 1 * hp:2 * hp] + gh[:, 1 * hp:2 * hp])
        n = jnp.tanh(gi_t[:, 2 * hp:3 * hp] + r * gh[:, 2 * hp:3 * hp])
        h_new = (1.0 - z) * n + z * h_prev
        # Padded time steps (t >= seq_len) must be no-ops.
        t_global = c * t_blk + j
        return jnp.where(t_global < seq_len, h_new, h_prev)

    # Unrolled so the LLO scheduler can overlap MXU push/pop, VPU and EUP work
    # of adjacent dependent steps.
    h_scratch[...] = lax.fori_loop(0, t_blk, step, h_scratch[...], unroll=True)

    @pl.when(c == pl.num_programs(1) - 1)
    def _():
        out_ref[...] = h_scratch[...]


def inter_utterance_encoder(x, w_ih, w_hh, b_ih, b_hh, *,
                            t_blk=16, compute_dtype=jnp.float32):
    """Pallas GRU forward matching InterUtteranceEncoder.forward.

    x:    (B, T, I) float32, batch_first like torch.nn.GRU
    w_ih: (3H, I), w_hh: (3H, H), b_ih/b_hh: (3H,)   -- torch parameter layout
    Returns h_n reshaped to (B, 1, H).
    compute_dtype: dtype of the streamed gi chunk / resident W_hh operands fed to
      the MXU (set jnp.bfloat16 on v6e/v7x for 2x MXU rate and half the DMA bytes;
      default f32 to keep tight numerical agreement with the f32 reference).
    """
    B, T, I = x.shape
    H = w_hh.shape[1]
    f32 = jnp.float32

    H_pad = _round_up(H, 128)            # lanes
    B_pad = _round_up(B, 8)              # sublanes
    t_blk = max(1, min(int(t_blk), T))
    n_chunks = pl.cdiv(T, t_blk)
    T_pad = n_chunks * t_blk

    # Split the (independent) batch dim into two grid blocks when big enough so
    # the "parallel" axis can be sharded across v7x's two TensorCores.
    n_b_blocks = 2 if (B_pad >= 16 and B_pad % 16 == 0) else 1
    B_blk = B_pad // n_b_blocks

    # --- parameters, padded to lane-aligned per-gate chunks -------------------
    wih_pad = _pad_gates_last(jnp.transpose(w_ih).astype(f32), H, H_pad)   # (I, 3*H_pad)
    whh_pad = _pad_gates_last(jnp.transpose(w_hh).astype(f32), H, H_pad)   # (H, 3*H_pad)
    whh_pad = jnp.pad(whh_pad, ((0, H_pad - H), (0, 0)))                   # (H_pad, 3*H_pad)
    bih_pad = _pad_gates_last(b_ih.astype(f32)[None, :], H, H_pad)[0]      # (3*H_pad,)
    bhh_pad = _pad_gates_last(b_hh.astype(f32)[None, :], H, H_pad)         # (1, 3*H_pad)

    # --- input projection hoisted out of the recurrence -----------------------
    # One large (B*T, I) x (I, 3*H_pad) matmul, produced directly time-major
    # (no separate transpose pass over x).
    gi = jnp.einsum("bti,ih->tbh", x.astype(f32), wih_pad,
                    preferred_element_type=f32) + bih_pad[None, None, :]
    gi = jnp.pad(gi, ((0, T_pad - T), (0, B_pad - B), (0, 0))).astype(compute_dtype)
    whh_k = whh_pad.astype(compute_dtype)

    kernel = functools.partial(_gru_recurrent_kernel, seq_len=T, t_blk=t_blk)

    # Explicit VMEM budget (important on v7x's 64 MiB physical / 32 MiB default):
    # double-buffered gi chunk + single-buffered resident weights + out/scratch.
    itemsize = jnp.dtype(compute_dtype).itemsize
    vmem_need = (2 * t_blk * B_blk * 3 * H_pad * itemsize
                 + H_pad * 3 * H_pad * itemsize
                 + 3 * H_pad * 4
                 + 3 * B_blk * H_pad * 4)
    vmem_limit = int(min(max(2 * vmem_need, 16 * 1024 * 1024), 64 * 1024 * 1024))

    h_pad_out = pl.pallas_call(
        kernel,
        out_shape=jax.ShapeDtypeStruct((B_pad, H_pad), jnp.float32),
        grid_spec=pltpu.PrefetchScalarGridSpec(
            num_scalar_prefetch=0,
            grid=(n_b_blocks, n_chunks),
            in_specs=[
                # streamed, double-buffered chunk of precomputed input projections
                pl.BlockSpec((t_blk, B_blk, 3 * H_pad), lambda b, c: (c, b, 0)),
                # recurrent weights / bias: whole-array, single-buffered, VMEM-resident
                pl.BlockSpec(memory_space=pltpu.MemorySpace.VMEM),
                pl.BlockSpec(memory_space=pltpu.MemorySpace.VMEM),
            ],
            out_specs=pl.BlockSpec((B_blk, H_pad), lambda b, c: (b, 0)),
            scratch_shapes=[pltpu.VMEM((B_blk, H_pad), jnp.float32)],
        ),
        compiler_params=pltpu.CompilerParams(
            dimension_semantics=("parallel", "arbitrary"),
            vmem_limit_bytes=vmem_limit,
        ),
    )(gi, whh_k, bhh_pad)

    # h_n.view(x.size(0), -1, hid_size) -> (B, 1, H) for a 1-layer unidirectional GRU.
    return h_pad_out[:B, :H].reshape(B, 1, H)


def _gru_reference(x, w_ih, w_hh, b_ih, b_hh):
    """Pure-JAX reference (lax.scan) for correctness checking."""
    B, T, I = x.shape
    H = w_hh.shape[1]
    wih_t = jnp.transpose(w_ih)
    whh_t = jnp.transpose(w_hh)

    def step(h, x_t):
        gi = x_t @ wih_t + b_ih
        gh = h @ whh_t + b_hh
        r = jax.nn.sigmoid(gi[:, :H] + gh[:, :H])
        z = jax.nn.sigmoid(gi[:, H:2 * H] + gh[:, H:2 * H])
        n = jnp.tanh(gi[:, 2 * H:] + r * gh[:, 2 * H:])
        h_new = (1.0 - z) * n + z * h
        return h_new, None

    h0 = jnp.zeros((B, H), jnp.float32)
    h_n, _ = lax.scan(step, h0, jnp.transpose(x, (1, 0, 2)))
    return h_n.reshape(B, 1, H)


if __name__ == "__main__":
    # Small shapes consistent with the module: batch=2, seq=8, inp_size=16, hid_size=32.
    B, T, I, H = 2, 8, 16, 32

    key = jax.random.PRNGKey(0)
    kx, k1, k2, k3, k4 = jax.random.split(key, 5)

    x = jax.random.normal(kx, (B, T, I), dtype=jnp.float32)

    # Deterministic parameter init (uniform(-1/sqrt(H), 1/sqrt(H)), like torch.nn.GRU).
    bound = 1.0 / jnp.sqrt(jnp.float32(H))
    w_ih = jax.random.uniform(k1, (3 * H, I), jnp.float32, -bound, bound)
    w_hh = jax.random.uniform(k2, (3 * H, H), jnp.float32, -bound, bound)
    b_ih = jax.random.uniform(k3, (3 * H,), jnp.float32, -bound, bound)
    b_hh = jax.random.uniform(k4, (3 * H,), jnp.float32, -bound, bound)

    out = inter_utterance_encoder(x, w_ih, w_hh, b_ih, b_hh)
    out = jax.block_until_ready(out)

    ref = _gru_reference(x, w_ih, w_hh, b_ih, b_hh)
    assert out.shape == (B, 1, H), out.shape
    assert jnp.allclose(out, ref, atol=1e-5, rtol=1e-5), "mismatch vs reference GRU"

    print("KERNEL_OK")
</pallas_src>

<mosaic_0001>
module attributes {stable_mosaic.version = 11 : i64} {
  func.func @_gru_recurrent_kernel(%arg0: i32, %arg1: i32, %arg2: memref<8x8x384xf32, #tpu.memory_space<vmem>>, %arg3: memref<128x384xf32, #tpu.memory_space<vmem>>, %arg4: memref<1x384xf32, #tpu.memory_space<vmem>>, %arg5: memref<8x128xf32, #tpu.memory_space<vmem>>, %arg6: memref<8x128xf32, #tpu.memory_space<vmem>>) attributes {dimension_semantics = [#tpu.dimension_semantics<parallel>, #tpu.dimension_semantics<arbitrary>], iteration_bounds = array<i64: 1, 1>, scalar_prefetch = 0 : i64, scratch_operands = 1 : i64, tpu.core_type = #tpu.core_type<tc>, window_params = [{transform_indices = @transform_0, window_bounds = array<i64: 8, 8, 384>}, {pipeline_mode = #tpu.pipeline_mode<synchronous>, transform_indices = @transform_1, window_bounds = array<i64: 128, 384>}, {pipeline_mode = #tpu.pipeline_mode<synchronous>, transform_indices = @transform_2, window_bounds = array<i64: 1, 384>}, {transform_indices = @transform_3, window_bounds = array<i64: 8, 128>}]} {
    %c0_i32 = arith.constant 0 : i32
    %0 = arith.cmpi eq, %arg1, %c0_i32 : i32
    %1 = arith.extui %0 : i1 to i32
    %c0_i32_0 = arith.constant 0 : i32
    %2 = arith.cmpi ne, %1, %c0_i32_0 : i32
    scf.if %2 {
      %cst_74 = arith.constant 0.000000e+00 : f32
      %298 = vector.broadcast %cst_74 : f32 to vector<8x128xf32>
      %c0_75 = arith.constant 0 : index
      %c0_76 = arith.constant 0 : index
      %299 = vector.load %arg6[%c0_75, %c0_76] : memref<8x128xf32, #tpu.memory_space<vmem>>, vector<8x128xf32>
      tpu.vector_store %arg6[%c0_75, %c0_76], %298 {strides = array<i32>} : memref<8x128xf32, #tpu.memory_space<vmem>>, vector<8x128xf32>,
    } else {
    }
    %c0 = arith.constant 0 : index
    %c0_1 = arith.constant 0 : index
    %3 = vector.load %arg3[%c0, %c0_1] : memref<128x384xf32, #tpu.memory_space<vmem>>, vector<128x384xf32>
    %c0_2 = arith.constant 0 : index
    %c0_3 = arith.constant 0 : index
    %4 = vector.load %arg4[%c0_2, %c0_3] : memref<1x384xf32, #tpu.memory_space<vmem>>, vector<1x384xf32>
    %c0_4 = arith.constant 0 : index
    %c0_5 = arith.constant 0 : index
    %5 = vector.load %arg6[%c0_4, %c0_5] : memref<8x128xf32, #tpu.memory_space<vmem>>, vector<8x128xf32>
    %c0_i32_6 = arith.constant 0 : i32
    %6 = arith.index_cast %c0_i32_6 : i32 to index
    %c0_7 = arith.constant 0 : index
    %c0_8 = arith.constant 0 : index
    %7 = vector.load %arg2[%6, %c0_7, %c0_8] : memref<8x8x384xf32, #tpu.memory_space<vmem>>, vector<1x8x384xf32>
    %8 = vector.shape_cast %7 : vector<1x8x384xf32> to vector<8x384xf32>
    %cst = arith.constant dense<0.000000e+00> : vector<8x384xf32>
    %9 = tpu.matmul %5, %3, %cst {dimension_numbers = #tpu.dot_dimension_numbers<[1], [0], [0], [1], [0, 0, 1, 1], [], []>} : vector<8x128xf32>, vector<128x384xf32>, vector<8x384xf32> -> vector<8x384xf32>
    %10 = vector.broadcast %4 : vector<1x384xf32> to vector<8x384xf32>
    %11 = arith.addf %9, %10 : vector<8x384xf32>
    %12 = vector.extract_strided_slice %8 {offsets = [0, 0], sizes = [8, 128], strides = [1, 1]} : vector<8x384xf32> to vector<8x128xf32>
    %13 = vector.extract_strided_slice %11 {offsets = [0, 0], sizes = [8, 128], strides = [1, 1]} : vector<8x384xf32> to vector<8x128xf32>
    %14 = arith.addf %12, %13 : vector<8x128xf32>
    %15 = arith.negf %14 : vector<8x128xf32>
    %16 = math.exp %15 : vector<8x128xf32>
    %cst_9 = arith.constant 1.000000e+00 : f32
    %17 = vector.broadcast %cst_9 : f32 to vector<8x128xf32>
    %18 = arith.addf %17, %16 : vector<8x128xf32>
    %19 = arith.divf %17, %18 : vector<8x128xf32>
    %20 = vector.extract_strided_slice %8 {offsets = [0, 128], sizes = [8, 128], strides = [1, 1]} : vector<8x384xf32> to vector<8x128xf32>
    %21 = vector.extract_strided_slice %11 {offsets = [0, 128], sizes = [8, 128], strides = [1, 1]} : vector<8x384xf32> to vector<8x128xf32>
    %22 = arith.addf %20, %21 : vector<8x128xf32>
    %23 = arith.negf %22 : vector<8x128xf32>
    %24 = math.exp %23 : vector<8x128xf32>
    %cst_10 = arith.constant 1.000000e+00 : f32
    %25 = vector.broadcast %cst_10 : f32 to vector<8x128xf32>
    %26 = arith.addf %25, %24 : vector<8x128xf32>
    %27 = arith.divf %25, %26 : vector<8x128xf32>
    %28 = vector.extract_strided_slice %8 {offsets = [0, 256], sizes = [8, 128], strides = [1, 1]} : vector<8x384xf32> to vector<8x128xf32>
    %29 = vector.extract_strided_slice %11 {offsets = [0, 256], sizes = [8, 128], strides = [1, 1]} : vector<8x384xf32> to vector<8x128xf32>
    %30 = arith.mulf %19, %29 : vector<8x128xf32>
    %31 = arith.addf %28, %30 : vector<8x128xf32>
    %32 = math.tanh %31 : vector<8x128xf32>
    %cst_11 = arith.constant 1.000000e+00 : f32
    %33 = vector.broadcast %cst_11 : f32 to vector<8x128xf32>
    %34 = arith.subf %33, %27 : vector<8x128xf32>
    %35 = arith.mulf %34, %32 : vector<8x128xf32>
    %36 = arith.mulf %27, %5 : vector<8x128xf32>
    %37 = arith.addf %35, %36 : vector<8x128xf32>
    %c8_i32 = arith.constant 8 : i32
    %38 = arith.muli %arg1, %c8_i32 : i32
    %39 = arith.addi %38, %c0_i32_6 : i32
    %c8_i32_12 = arith.constant 8 : i32
    %40 = arith.cmpi slt, %39, %c8_i32_12 : i32
    %41 = arith.select %40, %37, %5 : vector<8x128xf32>
    %c1_i32 = arith.constant 1 : i32
    %42 = arith.index_cast %c1_i32 : i32 to index
    %c0_13 = arith.constant 0 : index
    %c0_14 = arith.constant 0 : index
    %43 = vector.load %arg2[%42, %c0_13, %c0_14] : memref<8x8x384xf32, #tpu.memory_space<vmem>>, vector<1x8x384xf32>
    %44 = vector.shape_cast %43 : vector<1x8x384xf32> to vector<8x384xf32>
    %cst_15 = arith.constant dense<0.000000e+00> : vector<8x384xf32>
    %45 = tpu.matmul %41, %3, %cst_15 {dimension_numbers = #tpu.dot_dimension_numbers<[1], [0], [0], [1], [0, 0, 1, 1], [], []>} : vector<8x128xf32>, vector<128x384xf32>, vector<8x384xf32> -> vector<8x384xf32>
    %46 = vector.broadcast %4 : vector<1x384xf32> to vector<8x384xf32>
    %47 = arith.addf %45, %46 : vector<8x384xf32>
    %48 = vector.extract_strided_slice %44 {offsets = [0, 0], sizes = [8, 128], strides = [1, 1]} : vector<8x384xf32> to vector<8x128xf32>
    %49 = vector.extract_strided_slice %47 {offsets = [0, 0], sizes = [8, 128], strides = [1, 1]} : vector<8x384xf32> to vector<8x128xf32>
    %50 = arith.addf %48, %49 : vector<8x128xf32>
    %51 = arith.negf %50 : vector<8x128xf32>
    %52 = math.exp %51 : vector<8x128xf32>
    %cst_16 = arith.constant 1.000000e+00 : f32
    %53 = vector.broadcast %cst_16 : f32 to vector<8x128xf32>
    %54 = arith.addf %53, %52 : vector<8x128xf32>
    %55 = arith.divf %53, %54 : vector<8x128xf32>
    %56 = vector.extract_strided_slice %44 {offsets = [0, 128], sizes = [8, 128], strides = [1, 1]} : vector<8x384xf32> to vector<8x128xf32>
    %57 = vector.extract_strided_slice %47 {offsets = [0, 128], sizes = [8, 128], strides = [1, 1]} : vector<8x384xf32> to vector<8x128xf32>
    %58 = arith.addf %56, %57 : vector<8x128xf32>
    %59 = arith.negf %58 : vector<8x128xf32>
    %60 = math.exp %59 : vector<8x128xf32>
    %cst_17 = arith.constant 1.000000e+00 : f32
    %61 = vector.broadcast %cst_17 : f32 to vector<8x128xf32>
    %62 = arith.addf %61, %60 : vector<8x128xf32>
    %63 = arith.divf %61, %62 : vector<8x128xf32>
    %64 = vector.extract_strided_slice %44 {offsets = [0, 256], sizes = [8, 128], strides = [1, 1]} : vector<8x384xf32> to vector<8x128xf32>
    %65 = vector.extract_strided_slice %47 {offsets = [0, 256], sizes = [8, 128], strides = [1, 1]} : vector<8x384xf32> to vector<8x128xf32>
    %66 = arith.mulf %55, %65 : vector<8x128xf32>
    %67 = arith.addf %64, %66 : vector<8x128xf32>
    %68 = math.tanh %67 : vector<8x128xf32>
    %cst_18 = arith.constant 1.000000e+00 : f32
    %69 = vector.broadcast %cst_18 : f32 to vector<8x128xf32>
    %70 = arith.subf %69, %63 : vector<8x128xf32>
    %71 = arith.mulf %70, %68 : vector<8x128xf32>
    %72 = arith.mulf %63, %41 : vector<8x128xf32>
    %73 = arith.addf %71, %72 : vector<8x128xf32>
    %c8_i32_19 = arith.constant 8 : i32
    %74 = arith.muli %arg1, %c8_i32_19 : i32
    %75 = arith.addi %74, %c1_i32 : i32
    %c8_i32_20 = arith.constant 8 : i32
    %76 = arith.cmpi slt, %75, %c8_i32_20 : i32
    %77 = arith.select %76, %73, %41 : vector<8x128xf32>
    %c2_i32 = arith.constant 2 : i32
    %78 = arith.index_cast %c2_i32 : i32 to index
    %c0_21 = arith.constant 0 : index
    %c0_22 = arith.constant 0 : index
    %79 = vector.load %arg2[%78, %c0_21, %c0_22] : memref<8x8x384xf32, #tpu.memory_space<vmem>>, vector<1x8x384xf32>
    %80 = vector.shape_cast %79 : vector<1x8x384xf32> to vector<8x384xf32>
    %cst_23 = arith.constant dense<0.000000e+00> : vector<8x384xf32>
    %81 = tpu.matmul %77, %3, %cst_23 {dimension_numbers = #tpu.dot_dimension_numbers<[1], [0], [0], [1], [0, 0, 1, 1], [], []>} : vector<8x128xf32>, vector<128x384xf32>, vector<8x384xf32> -> vector<8x384xf32>
    %82 = vector.broadcast %4 : vector<1x384xf32> to vector<8x384xf32>
    %83 = arith.addf %81, %82 : vector<8x384xf32>
    %84 = vector.extract_strided_slice %80 {offsets = [0, 0], sizes = [8, 128], strides = [1, 1]} : vector<8x384xf32> to vector<8x128xf32>
    %85 = vector.extract_strided_slice %83 {offsets = [0, 0], sizes = [8, 128], strides = [1, 1]} : vector<8x384xf32> to vector<8x128xf32>
    %86 = arith.addf %84, %85 : vector<8x128xf32>
    %87 = arith.negf %86 : vector<8x128xf32>
    %88 = math.exp %87 : vector<8x128xf32>
    %cst_24 = arith.constant 1.000000e+00 : f32
    %89 = vector.broadcast %cst_24 : f32 to vector<8x128xf32>
    %90 = arith.addf %89, %88 : vector<8x128xf32>
    %91 = arith.divf %89, %90 : vector<8x128xf32>
    %92 = vector.extract_strided_slice %80 {offsets = [0, 128], sizes = [8, 128], strides = [1, 1]} : vector<8x384xf32> to vector<8x128xf32>
    %93 = vector.extract_strided_slice %83 {offsets = [0, 128], sizes = [8, 128], strides = [1, 1]} : vector<8x384xf32> to vector<8x128xf32>
    %94 = arith.addf %92, %93 : vector<8x128xf32>
    %95 = arith.negf %94 : vector<8x128xf32>
    %96 = math.exp %95 : vector<8x128xf32>
    %cst_25 = arith.constant 1.000000e+00 : f32
    %97 = vector.broadcast %cst_25 : f32 to vector<8x128xf32>
    %98 = arith.addf %97, %96 : vector<8x128xf32>
    %99 = arith.divf %97, %98 : vector<8x128xf32>
    %100 = vector.extract_strided_slice %80 {offsets = [0, 256], sizes = [8, 128], strides = [1, 1]} : vector<8x384xf32> to vector<8x128xf32>
    %101 = vector.extract_strided_slice %83 {offsets = [0, 256], sizes = [8, 128], strides = [1, 1]} : vector<8x384xf32> to vector<8x128xf32>
    %102 = arith.mulf %91, %101 : vector<8x128xf32>
    %103 = arith.addf %100, %102 : vector<8x128xf32>
    %104 = math.tanh %103 : vector<8x128xf32>
    %cst_26 = arith.constant 1.000000e+00 : f32
    %105 = vector.broadcast %cst_26 : f32 to vector<8x128xf32>
    %106 = arith.subf %105, %99 : vector<8x128xf32>
    %107 = arith.mulf %106, %104 : vector<8x128xf32>
    %108 = arith.mulf %99, %77 : vector<8x128xf32>
    %109 = arith.addf %107, %108 : vector<8x128xf32>
    %c8_i32_27 = arith.constant 8 : i32
    %110 = arith.muli %arg1, %c8_i32_27 : i32
    %111 = arith.addi %110, %c2_i32 : i32
    %c8_i32_28 = arith.constant 8 : i32
    %112 = arith.cmpi slt, %111, %c8_i32_28 : i32
    %113 = arith.select %112, %109, %77 : vector<8x128xf32>
    %c3_i32 = arith.constant 3 : i32
    %114 = arith.index_cast %c3_i32 : i32 to index
    %c0_29 = arith.constant 0 : index
    %c0_30 = arith.constant 0 : index
    %115 = vector.load %arg2[%114, %c0_29, %c0_30] : memref<8x8x384xf32, #tpu.memory_space<vmem>>, vector<1x8x384xf32>
    %116 = vector.shape_cast %115 : vector<1x8x384xf32> to vector<8x384xf32>
    %cst_31 = arith.constant dense<0.000000e+00> : vector<8x384xf32>
    %117 = tpu.matmul %113, %3, %cst_31 {dimension_numbers = #tpu.dot_dimension_numbers<[1], [0], [0], [1], [0, 0, 1, 1], [], []>} : vector<8x128xf32>, vector<128x384xf32>, vector<8x384xf32> -> vector<8x384xf32>
    %118 = vector.broadcast %4 : vector<1x384xf32> to vector<8x384xf32>
    %119 = arith.addf %117, %118 : vector<8x384xf32>
    %120 = vector.extract_strided_slice %116 {offsets = [0, 0], sizes = [8, 128], strides = [1, 1]} : vector<8x384xf32> to vector<8x128xf32>
    %121 = vector.extract_strided_slice %119 {offsets = [0, 0], sizes = [8, 128], strides = [1, 1]} : vector<8x384xf32> to vector<8x128xf32>
    %122 = arith.addf %120, %121 : vector<8x128xf32>
    %123 = arith.negf %122 : vector<8x128xf32>
    %124 = math.exp %123 : vector<8x128xf32>
    %cst_32 = arith.constant 1.000000e+00 : f32
    %125 = vector.broadcast %cst_32 : f32 to vector<8x128xf32>
    %126 = arith.addf %125, %124 : vector<8x128xf32>
    %127 = arith.divf %125, %126 : vector<8x128xf32>
    %128 = vector.extract_strided_slice %116 {offsets = [0, 128], sizes = [8, 128], strides = [1, 1]} : vector<8x384xf32> to vector<8x128xf32>
    %129 = vector.extract_strided_slice %119 {offsets = [0, 128], sizes = [8, 128], strides = [1, 1]} : vector<8x384xf32> to vector<8x128xf32>
    %130 = arith.addf %128, %129 : vector<8x128xf32>
    %131 = arith.negf %130 : vector<8x128xf32>
    %132 = math.exp %131 : vector<8x128xf32>
    %cst_33 = arith.constant 1.000000e+00 : f32
    %133 = vector.broadcast %cst_33 : f32 to vector<8x128xf32>
    %134 = arith.addf %133, %132 : vector<8x128xf32>
    %135 = arith.divf %133, %134 : vector<8x128xf32>
    %136 = vector.extract_strided_slice %116 {offsets = [0, 256], sizes = [8, 128], strides = [1, 1]} : vector<8x384xf32> to vector<8x128xf32>
    %137 = vector.extract_strided_slice %119 {offsets = [0, 256], sizes = [8, 128], strides = [1, 1]} : vector<8x384xf32> to vector<8x128xf32>
    %138 = arith.mulf %127, %137 : vector<8x128xf32>
    %139 = arith.addf %136, %138 : vector<8x128xf32>
    %140 = math.tanh %139 : vector<8x128xf32>
    %cst_34 = arith.constant 1.000000e+00 : f32
    %141 = vector.broadcast %cst_34 : f32 to vector<8x128xf32>
    %142 = arith.subf %141, %135 : vector<8x128xf32>
    %143 = arith.mulf %142, %140 : vector<8x128xf32>
    %144 = arith.mulf %135, %113 : vector<8x128xf32>
    %145 = arith.addf %143, %144 : vector<8x128xf32>
    %c8_i32_35 = arith.constant 8 : i32
    %146 = arith.muli %arg1, %c8_i32_35 : i32
    %147 = arith.addi %146, %c3_i32 : i32
    %c8_i32_36 = arith.constant 8 : i32
    %148 = arith.cmpi slt, %147, %c8_i32_36 : i32
    %149 = arith.select %148, %145, %113 : vector<8x128xf32>
    %c4_i32 = arith.constant 4 : i32
    %150 = arith.index_cast %c4_i32 : i32 to index
    %c0_37 = arith.constant 0 : index
    %c0_38 = arith.constant 0 : index
    %151 = vector.load %arg2[%150, %c0_37, %c0_38] : memref<8x8x384xf32, #tpu.memory_space<vmem>>, vector<1x8x384xf32>
    %152 = vector.shape_cast %151 : vector<1x8x384xf32> to vector<8x384xf32>
    %cst_39 = arith.constant dense<0.000000e+00> : vector<8x384xf32>
    %153 = tpu.matmul %149, %3, %cst_39 {dimension_numbers = #tpu.dot_dimension_numbers<[1], [0], [0], [1], [0, 0, 1, 1], [], []>} : vector<8x128xf32>, vector<128x384xf32>, vector<8x384xf32> -> vector<8x384xf32>
    %154 = vector.broadcast %4 : vector<1x384xf32> to vector<8x384xf32>
    %155 = arith.addf %153, %154 : vector<8x384xf32>
    %156 = vector.extract_strided_slice %152 {offsets = [0, 0], sizes = [8, 128], strides = [1, 1]} : vector<8x384xf32> to vector<8x128xf32>
    %157 = vector.extract_strided_slice %155 {offsets = [0, 0], sizes = [8, 128], strides = [1, 1]} : vector<8x384xf32> to vector<8x128xf32>
    %158 = arith.addf %156, %157 : vector<8x128xf32>
    %159 = arith.negf %158 : vector<8x128xf32>
    %160 = math.exp %159 : vector<8x128xf32>
    %cst_40 = arith.constant 1.000000e+00 : f32
    %161 = vector.broadcast %cst_40 : f32 to vector<8x128xf32>
    %162 = arith.addf %161, %160 : vector<8x128xf32>
    %163 = arith.divf %161, %162 : vector<8x128xf32>
    %164 = vector.extract_strided_slice %152 {offsets = [0, 128], sizes = [8, 128], strides = [1, 1]} : vector<8x384xf32> to vector<8x128xf32>
    %165 = vector.extract_strided_slice %155 {offsets = [0, 128], sizes = [8, 128], strides = [1, 1]} : vector<8x384xf32> to vector<8x128xf32>
    %166 = arith.addf %164, %165 : vector<8x128xf32>
    %167 = arith.negf %166 : vector<8x128xf32>
    %168 = math.exp %167 : vector<8x128xf32>
    %cst_41 = arith.constant 1.000000e+00 : f32
    %169 = vector.broadcast %cst_41 : f32 to vector<8x128xf32>
    %170 = arith.addf %169, %168 : vector<8x128xf32>
    %171 = arith.divf %169, %170 : vector<8x128xf32>
    %172 = vector.extract_strided_slice %152 {offsets = [0, 256], sizes = [8, 128], strides = [1, 1]} : vector<8x384xf32> to vector<8x128xf32>
    %173 = vector.extract_strided_slice %155 {offsets = [0, 256], sizes = [8, 128], strides = [1, 1]} : vector<8x384xf32> to vector<8x128xf32>
    %174 = arith.mulf %163, %173 : vector<8x128xf32>
    %175 = arith.addf %172, %174 : vector<8x128xf32>
    %176 = math.tanh %175 : vector<8x128xf32>
    %cst_42 = arith.constant 1.000000e+00 : f32
    %177 = vector.broadcast %cst_42 : f32 to vector<8x128xf32>
    %178 = arith.subf %177, %171 : vector<8x128xf32>
    %179 = arith.mulf %178, %176 : vector<8x128xf32>
    %180 = arith.mulf %171, %149 : vector<8x128xf32>
    %181 = arith.addf %179, %180 : vector<8x128xf32>
    %c8_i32_43 = arith.constant 8 : i32
    %182 = arith.muli %arg1, %c8_i32_43 : i32
    %183 = arith.addi %182, %c4_i32 : i32
    %c8_i32_44 = arith.constant 8 : i32
    %184 = arith.cmpi slt, %183, %c8_i32_44 : i32
    %185 = arith.select %184, %181, %149 : vector<8x128xf32>
    %c5_i32 = arith.constant 5 : i32
    %186 = arith.index_cast %c5_i32 : i32 to index
    %c0_45 = arith.constant 0 : index
    %c0_46 = arith.constant 0 : index
    %187 = vector.load %arg2[%186, %c0_45, %c0_46] : memref<8x8x384xf32, #tpu.memory_space<vmem>>, vector<1x8x384xf32>
    %188 = vector.shape_cast %187 : vector<1x8x384xf32> to vector<8x384xf32>
    %cst_47 = arith.constant dense<0.000000e+00> : vector<8x384xf32>
    %189 = tpu.matmul %185, %3, %cst_47 {dimension_numbers = #tpu.dot_dimension_numbers<[1], [0], [0], [1], [0, 0, 1, 1], [], []>} : vector<8x128xf32>, vector<128x384xf32>, vector<8x384xf32> -> vector<8x384xf32>
    %190 = vector.broadcast %4 : vector<1x384xf32> to vector<8x384xf32>
    %191 = arith.addf %189, %190 : vector<8x384xf32>
    %192 = vector.extract_strided_slice %188 {offsets = [0, 0], sizes = [8, 128], strides = [1, 1]} : vector<8x384xf32> to vector<8x128xf32>
    %193 = vector.extract_strided_slice %191 {offsets = [0, 0], sizes = [8, 128], strides = [1, 1]} : vector<8x384xf32> to vector<8x128xf32>
    %194 = arith.addf %192, %193 : vector<8x128xf32>
    %195 = arith.negf %194 : vector<8x128xf32>
    %196 = math.exp %195 : vector<8x128xf32>
    %cst_48 = arith.constant 1.000000e+00 : f32
    %197 = vector.broadcast %cst_48 : f32 to vector<8x128xf32>
    %198 = arith.addf %197, %196 : vector<8x128xf32>
    %199 = arith.divf %197, %198 : vector<8x128xf32>
    %200 = vector.extract_strided_slice %188 {offsets = [0, 128], sizes = [8, 128], strides = [1, 1]} : vector<8x384xf32> to vector<8x128xf32>
    %201 = vector.extract_strided_slice %191 {offsets = [0, 128], sizes = [8, 128], strides = [1, 1]} : vector<8x384xf32> to vector<8x128xf32>
    %202 = arith.addf %200, %201 : vector<8x128xf32>
    %203 = arith.negf %202 : vector<8x128xf32>
    %204 = math.exp %203 : vector<8x128xf32>
    %cst_49 = arith.constant 1.000000e+00 : f32
    %205 = vector.broadcast %cst_49 : f32 to vector<8x128xf32>
    %206 = arith.addf %205, %204 : vector<8x128xf32>
    %207 = arith.divf %205, %206 : vector<8x128xf32>
    %208 = vector.extract_strided_slice %188 {offsets = [0, 256], sizes = [8, 128], strides = [1, 1]} : vector<8x384xf32> to vector<8x128xf32>
    %209 = vector.extract_strided_slice %191 {offsets = [0, 256], sizes = [8, 128], strides = [1, 1]} : vector<8x384xf32> to vector<8x128xf32>
    %210 = arith.mulf %199, %209 : vector<8x128xf32>
    %211 = arith.addf %208, %210 : vector<8x128xf32>
    %212 = math.tanh %211 : vector<8x128xf32>
    %cst_50 = arith.constant 1.000000e+00 : f32
    %213 = vector.broadcast %cst_50 : f32 to vector<8x128xf32>
    %214 = arith.subf %213, %207 : vector<8x128xf32>
    %215 = arith.mulf %214, %212 : vector<8x128xf32>
    %216 = arith.mulf %207, %185 : vector<8x128xf32>
    %217 = arith.addf %215, %216 : vector<8x128xf32>
    %c8_i32_51 = arith.constant 8 : i32
    %218 = arith.muli %arg1, %c8_i32_51 : i32
    %219 = arith.addi %218, %c5_i32 : i32
    %c8_i32_52 = arith.constant 8 : i32
    %220 = arith.cmpi slt, %219, %c8_i32_52 : i32
    %221 = arith.select %220, %217, %185 : vector<8x128xf32>
    %c6_i32 = arith.constant 6 : i32
    %222 = arith.index_cast %c6_i32 : i32 to index
    %c0_53 = arith.constant 0 : index
    %c0_54 = arith.constant 0 : index
    %223 = vector.load %arg2[%222, %c0_53, %c0_54] : memref<8x8x384xf32, #tpu.memory_space<vmem>>, vector<1x8x384xf32>
    %224 = vector.shape_cast %223 : vector<1x8x384xf32> to vector<8x384xf32>
    %cst_55 = arith.constant dense<0.000000e+00> : vector<8x384xf32>
    %225 = tpu.matmul %221, %3, %cst_55 {dimension_numbers = #tpu.dot_dimension_numbers<[1], [0], [0], [1], [0, 0, 1, 1], [], []>} : vector<8x128xf32>, vector<128x384xf32>, vector<8x384xf32> -> vector<8x384xf32>
    %226 = vector.broadcast %4 : vector<1x384xf32> to vector<8x384xf32>
    %227 = arith.addf %225, %226 : vector<8x384xf32>
    %228 = vector.extract_strided_slice %224 {offsets = [0, 0], sizes = [8, 128], strides = [1, 1]} : vector<8x384xf32> to vector<8x128xf32>
    %229 = vector.extract_strided_slice %227 {offsets = [0, 0], sizes = [8, 128], strides = [1, 1]} : vector<8x384xf32> to vector<8x128xf32>
    %230 = arith.addf %228, %229 : vector<8x128xf32>
    %231 = arith.negf %230 : vector<8x128xf32>
    %232 = math.exp %231 : vector<8x128xf32>
    %cst_56 = arith.constant 1.000000e+00 : f32
    %233 = vector.broadcast %cst_56 : f32 to vector<8x128xf32>
    %234 = arith.addf %233, %232 : vector<8x128xf32>
    %235 = arith.divf %233, %234 : vector<8x128xf32>
    %236 = vector.extract_strided_slice %224 {offsets = [0, 128], sizes = [8, 128], strides = [1, 1]} : vector<8x384xf32> to vector<8x128xf32>
    %237 = vector.extract_strided_slice %227 {offsets = [0, 128], sizes = [8, 128], strides = [1, 1]} : vector<8x384xf32> to vector<8x128xf32>
    %238 = arith.addf %236, %237 : vector<8x128xf32>
    %239 = arith.negf %238 : vector<8x128xf32>
    %240 = math.exp %239 : vector<8x128xf32>
    %cst_57 = arith.constant 1.000000e+00 : f32
    %241 = vector.broadcast %cst_57 : f32 to vector<8x128xf32>
    %242 = arith.addf %241, %240 : vector<8x128xf32>
    %243 = arith.divf %241, %242 : vector<8x128xf32>
    %244 = vector.extract_strided_slice %224 {offsets = [0, 256], sizes = [8, 128], strides = [1, 1]} : vector<8x384xf32> to vector<8x128xf32>
    %245 = vector.extract_strided_slice %227 {offsets = [0, 256], sizes = [8, 128], strides = [1, 1]} : vector<8x384xf32> to vector<8x128xf32>
    %246 = arith.mulf %235, %245 : vector<8x128xf32>
    %247 = arith.addf %244, %246 : vector<8x128xf32>
    %248 = math.tanh %247 : vector<8x128xf32>
    %cst_58 = arith.constant 1.000000e+00 : f32
    %249 = vector.broadcast %cst_58 : f32 to vector<8x128xf32>
    %250 = arith.subf %249, %243 : vector<8x128xf32>
    %251 = arith.mulf %250, %248 : vector<8x128xf32>
    %252 = arith.mulf %243, %221 : vector<8x128xf32>
    %253 = arith.addf %251, %252 : vector<8x128xf32>
    %c8_i32_59 = arith.constant 8 : i32
    %254 = arith.muli %arg1, %c8_i32_59 : i32
    %255 = arith.addi %254, %c6_i32 : i32
    %c8_i32_60 = arith.constant 8 : i32
    %256 = arith.cmpi slt, %255, %c8_i32_60 : i32
    %257 = arith.select %256, %253, %221 : vector<8x128xf32>
    %c7_i32 = arith.constant 7 : i32
    %258 = arith.index_cast %c7_i32 : i32 to index
    %c0_61 = arith.constant 0 : index
    %c0_62 = arith.constant 0 : index
    %259 = vector.load %arg2[%258, %c0_61, %c0_62] : memref<8x8x384xf32, #tpu.memory_space<vmem>>, vector<1x8x384xf32>
    %260 = vector.shape_cast %259 : vector<1x8x384xf32> to vector<8x384xf32>
    %cst_63 = arith.constant dense<0.000000e+00> : vector<8x384xf32>
    %261 = tpu.matmul %257, %3, %cst_63 {dimension_numbers = #tpu.dot_dimension_numbers<[1], [0], [0], [1], [0, 0, 1, 1], [], []>} : vector<8x128xf32>, vector<128x384xf32>, vector<8x384xf32> -> vector<8x384xf32>
    %262 = vector.broadcast %4 : vector<1x384xf32> to vector<8x384xf32>
    %263 = arith.addf %261, %262 : vector<8x384xf32>
    %264 = vector.extract_strided_slice %260 {offsets = [0, 0], sizes = [8, 128], strides = [1, 1]} : vector<8x384xf32> to vector<8x128xf32>
    %265 = vector.extract_strided_slice %263 {offsets = [0, 0], sizes = [8, 128], strides = [1, 1]} : vector<8x384xf32> to vector<8x128xf32>
    %266 = arith.addf %264, %265 : vector<8x128xf32>
    %267 = arith.negf %266 : vector<8x128xf32>
    %268 = math.exp %267 : vector<8x128xf32>
    %cst_64 = arith.constant 1.000000e+00 : f32
    %269 = vector.broadcast %cst_64 : f32 to vector<8x128xf32>
    %270 = arith.addf %269, %268 : vector<8x128xf32>
    %271 = arith.divf %269, %270 : vector<8x128xf32>
    %272 = vector.extract_strided_slice %260 {offsets = [0, 128], sizes = [8, 128], strides = [1, 1]} : vector<8x384xf32> to vector<8x128xf32>
    %273 = vector.extract_strided_slice %263 {offsets = [0, 128], sizes = [8, 128], strides = [1, 1]} : vector<8x384xf32> to vector<8x128xf32>
    %274 = arith.addf %272, %273 : vector<8x128xf32>
    %275 = arith.negf %274 : vector<8x128xf32>
    %276 = math.exp %275 : vector<8x128xf32>
    %cst_65 = arith.constant 1.000000e+00 : f32
    %277 = vector.broadcast %cst_65 : f32 to vector<8x128xf32>
    %278 = arith.addf %277, %276 : vector<8x128xf32>
    %279 = arith.divf %277, %278 : vector<8x128xf32>
    %280 = vector.extract_strided_slice %260 {offsets = [0, 256], sizes = [8, 128], strides = [1, 1]} : vector<8x384xf32> to vector<8x128xf32>
    %281 = vector.extract_strided_slice %263 {offsets = [0, 256], sizes = [8, 128], strides = [1, 1]} : vector<8x384xf32> to vector<8x128xf32>
    %282 = arith.mulf %271, %281 : vector<8x128xf32>
    %283 = arith.addf %280, %282 : vector<8x128xf32>
    %284 = math.tanh %283 : vector<8x128xf32>
    %cst_66 = arith.constant 1.000000e+00 : f32
    %285 = vector.broadcast %cst_66 : f32 to vector<8x128xf32>
    %286 = arith.subf %285, %279 : vector<8x128xf32>
    %287 = arith.mulf %286, %284 : vector<8x128xf32>
    %288 = arith.mulf %279, %257 : vector<8x128xf32>
    %289 = arith.addf %287, %288 : vector<8x128xf32>
    %c8_i32_67 = arith.constant 8 : i32
    %290 = arith.muli %arg1, %c8_i32_67 : i32
    %291 = arith.addi %290, %c7_i32 : i32
    %c8_i32_68 = arith.constant 8 : i32
    %292 = arith.cmpi slt, %291, %c8_i32_68 : i32
    %293 = arith.select %292, %289, %257 : vector<8x128xf32>
    %c8_i32_69 = arith.constant 8 : i32
    %c0_70 = arith.constant 0 : index
    %c0_71 = arith.constant 0 : index
    %294 = vector.load %arg6[%c0_70, %c0_71] : memref<8x128xf32, #tpu.memory_space<vmem>>, vector<8x128xf32>
    tpu.vector_store %arg6[%c0_70, %c0_71], %293 {strides = array<i32>} : memref<8x128xf32, #tpu.memory_space<vmem>>, vector<8x128xf32>,
    %c0_i32_72 = arith.constant 0 : i32
    %295 = arith.cmpi eq, %arg1, %c0_i32_72 : i32
    %296 = arith.extui %295 : i1 to i32
    %c0_i32_73 = arith.constant 0 : i32
    %297 = arith.cmpi ne, %296, %c0_i32_73 : i32
    scf.if %297 {
      %c0_74 = arith.constant 0 : index
      %c0_75 = arith.constant 0 : index
      %298 = vector.load %arg6[%c0_74, %c0_75] : memref<8x128xf32, #tpu.memory_space<vmem>>, vector<8x128xf32>
      %c0_76 = arith.constant 0 : index
      %c0_77 = arith.constant 0 : index
      %299 = vector.load %arg5[%c0_76, %c0_77] : memref<8x128xf32, #tpu.memory_space<vmem>>, vector<8x128xf32>
      tpu.vector_store %arg5[%c0_76, %c0_77], %298 {strides = array<i32>} : memref<8x128xf32, #tpu.memory_space<vmem>>, vector<8x128xf32>,
    } else {
    }
    return
  }
  func.func @transform_0(%arg0: i32, %arg1: i32) -> (i32, i32, i32) {
    %c0_i32 = arith.constant 0 : i32
    %c0_i32_0 = arith.constant 0 : i32
    return %arg1, %arg0, %c0_i32 : i32, i32, i32
  }
  func.func @transform_1(%arg0: i32, %arg1: i32) -> (i32, i32) {
    %c0_i32 = arith.constant 0 : i32
    %c0_i32_0 = arith.constant 0 : i32
    %c0_i32_1 = arith.constant 0 : i32
    return %c0_i32, %c0_i32_0 : i32, i32
  }
  func.func @transform_2(%arg0: i32, %arg1: i32) -> (i32, i32) {
    %c0_i32 = arith.constant 0 : i32
    %c0_i32_0 = arith.constant 0 : i32
    %c0_i32_1 = arith.constant 0 : i32
    return %c0_i32, %c0_i32_0 : i32, i32
  }
  func.func @transform_3(%arg0: i32, %arg1: i32) -> (i32, i32) {
    %c0_i32 = arith.constant 0 : i32
    %c0_i32_0 = arith.constant 0 : i32
    return %arg0, %c0_i32 : i32, i32
  }
}

</mosaic_0001>

<bundles_post_ra>
// kernel: tpu_custom_call.1
= control target key start
LH: loop header
LB: loop body
LE: loop exit
PB: predicated region body
PF: predicated region fallthrough
CT: control target
= control target key end

     0   :  { %8 = vsyncpa [#allocation4], 0  ;;  %s2973_s0 = inlined_call_operand.hbm [shape: f32[8,8,384], index: 0, kind: input, shape index: {}]   ;;  %s2974_s1 = inlined_call_operand.hbm [shape: f32[128,384], index: 1, kind: input, shape index: {}]   ;;  %s2975_s2 = inlined_call_operand.vmem [shape: f32[1,384], index: 2, kind: input, shape index: {}]   ;;  %s2976_s3 = inlined_call_operand.hbm [shape: f32[8,128], index: 3, kind: output, shape index: {}]  }
   0x1   :  { %9 = vsyncpa [#allocation7], 0 }
   0x2   :  { %10 = vsyncpa [#allocation5], 0  ;;  %s2144_s12 = smov [#allocation3]  }
   0x3   :  { %s16_s13 = sshll.u32 %s2144_s12, 4  ;;  %s17_s13 = int_to_ptr.vmem [resolvable:$true] %s16_s13 }
   0x4   :  { %s2086_s14 = scalar_lea.vmem %s17_s13, 3072  ;;  %p2091_p1 = scmp.lt.s32.totalorder %s17_s13, %s17_s13 }
   0x5   :  { %p2087_p0 = scmp.ne.s32.totalorder %s17_s13, %s2086_s14  ;;  %p2092_p2 = scmp.lt.s32.totalorder %s2086_s14, %s2086_s14 }
   0x7   :  { %p2093_p3 = por %p2092_p2, %p2091_p1 }
   0x9   :  { %p2094_p4 = pnand %p2093_p3, %p2087_p0 }
   0xb   :  { %2097 = shalt.err (!%p2094_p4)
}
   0xc   :  { %s2145_s15 = smov 384   ;;  %s2146_s16 = smov 24  }
   0xd   :  { %22 = dma.hbm_to_vmem [thread:$0]  %s2973_s0, 3072, %s17_s13, [#allocation4], %s2145_s15, %s2145_s15, %s2146_s16  }
   0xe   :  { %s2147_s19 = smov [#allocation6]  }
   0xf   :  { %s28_s20 = sshll.u32 %s2147_s19, 4  ;;  %s29_s20 = int_to_ptr.vmem [resolvable:$true] %s28_s20 }
  0x10   :  { %s2106_s21 = scalar_lea.vmem %s29_s20, 6144  ;;  %p2111_p6 = scmp.lt.s32.totalorder %s29_s20, %s29_s20 }
  0x11   :  { %p2107_p5 = scmp.ne.s32.totalorder %s29_s20, %s2106_s21  ;;  %p2112_p7 = scmp.lt.s32.totalorder %s2106_s21, %s2106_s21 }
  0x13   :  { %p2113_p8 = por %p2112_p7, %p2111_p6 }
  0x15   :  { %p2114_p9 = pnand %p2113_p8, %p2107_p5 }
  0x17   :  { %2117 = shalt.err (!%p2114_p9)
}
  0x18   :  { %34 = dma.hbm_to_vmem [thread:$0]  %s2974_s1, 6144, %s29_s20, [#allocation7], %s2145_s15, %s2145_s15, %s2146_s16  }
  0x19   :  { %2138 = dma.done.wait [#allocation4], 3072  }
  0x1a   :  { %2139 = vsyncadd [#allocation4], 4294964224 }
  0x1b   :  { %2140 = dma.done.wait [#allocation7], 6144  }
  0x1c   :  { %2141 = vsyncadd [#allocation7], 4294961152  ;;  %v2977_v0 = vmov 0.0   ;;  %vm2149_vm0 = vmmov 0   ;;  %v2181_v1 = vld [vmem:[#allocation6 + $0x170] sm:$0xff]  ;;  %v2183_v2 = vld [vmem:[#allocation6 + $0x168] sm:$0xff]  ;;  %v102_v49 = vlaneseq }
  0x1d   :  { %181 = vmatprep.mubr.f32.mxu0 %v2977_v0  ;;  %1663 = vmatprep.subr.mxu1 %v2977_v0  ;;  %3002 = vst [vmem:[#allocation12_spill] sm:$0xff] %v2181_v1  ;;  %v2185_v3 = vld [vmem:[#allocation6 + $0x158] sm:$0xff]  ;;  %v2188_v4 = vld [vmem:[#allocation6 + $0x150] sm:$0xff]  ;;  %v2191_v5 = vld [vmem:[#allocation6 + $0x140] sm:$0xff] }
  0x1e   :  { %1695 = vmatprep.mubr.msk.f32.mxu1 %vm2149_vm0, %v2977_v0  ;;  %117 = vmatprep.subr.mxu0 %v2181_v1  ;;  %v2194_v6 = vld [vmem:[#allocation6 + $0x138] sm:$0xff]  ;;  %v2197_v7 = vld [vmem:[#allocation6 + $0x128] sm:$0xff]  ;;  %v2200_v8 = vld [vmem:[#allocation6 + $0x120] sm:$0xff]  ;;  %v103_v50 = vshrl.u32 %v102_v49, 7 }
  0x1f   :  { %118 = vmatpush1.msra.mxu0 %v2183_v2  ;;  %v2203_v9 = vld [vmem:[#allocation6 + $0x110] sm:$0xff]  ;;  %v2206_v10 = vld [vmem:[#allocation6 + $0x108] sm:$0xff]  ;;  %v2209_v11 = vld [vmem:[#allocation6 + $0xf8] sm:$0xff] }
  0x20   :  { %119 = vmatprep.subr.mxu0 %v2185_v3  ;;  %v2212_v12 = vld [vmem:[#allocation6 + $0xf0] sm:$0xff]  ;;  %v2215_v13 = vld [vmem:[#allocation6 + $0xe0] sm:$0xff]  ;;  %v2217_v14 = vld [vmem:[#allocation6 + $0x178] sm:$0xff]  ;;  %v104_v51 = vsub.s32 0, %v103_v50  ;;  %v108_v54 = vsub.s32 1, %v103_v50 }
  0x21   :  { %120 = vmatpush1.msra.mxu0 %v2188_v4  ;;  %v2220_v15 = vld [vmem:[#allocation6 + $0xd8] sm:$0xff]  ;;  %1664 = vmatpush3.msra.mxu1 %v2217_v14  ;;  %v2223_v16 = vld [vmem:[#allocation6 + $0x160] sm:$0xff]  ;;  %v2226_v17 = vld [vmem:[#allocation6 + $0xc8] sm:$0xff] }
  0x22   :  { %121 = vmatprep.subr.mxu0 %v2191_v5  ;;  %1665 = vmatprep.subr.mxu1 %v2977_v0  ;;  %v2229_v18 = vld [vmem:[#allocation6 + $0x148] sm:$0xff]  ;;  %v2232_v19 = vld [vmem:[#allocation6 + $0xc0] sm:$0xff]  ;;  %v2236_v20 = vld [vmem:[#allocation6 + $0xb0] sm:$0xff] }
  0x23   :  { %122 = vmatpush1.msra.mxu0 %v2194_v6  ;;  %1666 = vmatpush3.msra.mxu1 %v2223_v16  ;;  %v2239_v21 = vld [vmem:[#allocation6 + $0x130] sm:$0xff]  ;;  %v2242_v22 = vld [vmem:[#allocation6 + $0xa8] sm:$0xff]  ;;  %v2246_v23 = vld [vmem:[#allocation6 + $0x98] sm:$0xff] }
  0x24   :  { %123 = vmatprep.subr.mxu0 %v2197_v7  ;;  %1667 = vmatprep.subr.mxu1 %v2977_v0  ;;  %v2249_v24 = vld [vmem:[#allocation6 + $0x118] sm:$0xff]  ;;  %v2252_v25 = vld [vmem:[#allocation6 + $0x90] sm:$0xff]  ;;  %v2256_v26 = vld [vmem:[#allocation6 + $0x80] sm:$0xff] }
  0x25   :  { %124 = vmatpush1.msra.mxu0 %v2200_v8  ;;  %1668 = vmatpush3.msra.mxu1 %v2229_v18  ;;  %v2259_v27 = vld [vmem:[#allocation6 + $0x100] sm:$0xff]  ;;  %v2262_v28 = vld [vmem:[#allocation6 + $0x78] sm:$0xff]  ;;  %v2266_v29 = vld [vmem:[#allocation6 + $0x68] sm:$0xff] }
  0x26   :  { %125 = vmatprep.subr.mxu0 %v2203_v9  ;;  %1669 = vmatprep.subr.mxu1 %v2977_v0  ;;  %v2269_v30 = vld [vmem:[#allocation6 + $0xe8] sm:$0xff]  ;;  %v2272_v31 = vld [vmem:[#allocation6 + $0x60] sm:$0xff]  ;;  %v2276_v32 = vld [vmem:[#allocation6 + $0x50] sm:$0xff] }
  0x27   :  { %126 = vmatpush1.msra.mxu0 %v2206_v10  ;;  %1670 = vmatpush3.msra.mxu1 %v2239_v21  ;;  %v2279_v33 = vld [vmem:[#allocation6 + $0xd0] sm:$0xff]  ;;  %v2282_v34 = vld [vmem:[#allocation6 + $0x48] sm:$0xff]  ;;  %v2286_v35 = vld [vmem:[#allocation6 + $0x38] sm:$0xff] }
  0x28   :  { %127 = vmatprep.subr.mxu0 %v2209_v11  ;;  %1671 = vmatprep.subr.mxu1 %v2977_v0  ;;  %v2289_v36 = vld [vmem:[#allocation6 + $0xb8] sm:$0xff]  ;;  %v2292_v37 = vld [vmem:[#allocation6 + $0x30] sm:$0xff]  ;;  %v2296_v38 = vld [vmem:[#allocation6 + $0x20] sm:$0xff] }
  0x29   :  { %128 = vmatpush1.msra.mxu0 %v2212_v12  ;;  %1672 = vmatpush3.msra.mxu1 %v2249_v24  ;;  %3003 = vst [vmem:[#allocation13_spill] sm:$0xff] %v2296_v38  ;;  %v2299_v39 = vld [vmem:[#allocation6 + $0xa0] sm:$0xff]  ;;  %v2302_v40 = vld [vmem:[#allocation6 + $0x18] sm:$0xff]  ;;  %v2306_v41 = vld [vmem:[#allocation6 + $0x8] sm:$0xff] }
  0x2a   :  { %129 = vmatprep.subr.mxu0 %v2215_v13  ;;  %1673 = vmatprep.subr.mxu1 %v2977_v0  ;;  %3004 = vst [vmem:[#allocation14_spill] sm:$0xff] %v2302_v40  ;;  %3005 = vst [vmem:[#allocation15_spill] sm:$0xff] %v2306_v41  ;;  %v2309_v42 = vld [vmem:[#allocation6 + $0x88] sm:$0xff]  ;;  %v2312_v43 = vld [vmem:[#allocation6] sm:$0xff] }
  0x2b   :  { %130 = vmatpush1.msra.mxu0 %v2220_v15  ;;  %1674 = vmatpush3.msra.mxu1 %v2259_v27  ;;  %3006 = vst [vmem:[#allocation16_spill] sm:$0xff] %v2312_v43  ;;  %v2317_v44 = vld [vmem:[#allocation6 + $0x70] sm:$0xff]  ;;  %v2323_v45 = vld [vmem:[#allocation6 + $0x58] sm:$0xff]  ;;  %v2328_v46 = vld [vmem:[#allocation6 + $0x40] sm:$0xff] }
  0x2c   :  { %131 = vmatprep.subr.mxu0 %v2226_v17  ;;  %1675 = vmatprep.subr.mxu1 %v2977_v0  ;;  %v2334_v47 = vld [vmem:[#allocation6 + $0x28] sm:$0xff]  ;;  %v2340_v48 = vld [vmem:[#allocation6 + $0x10] sm:$0xff]  ;;  %v96_v52 = vld [vmem:[%s2975_s2] sm:$0x7]  ;;  %s2150_s2 = smov [#allocation8]  }
  0x2d   :  { %132 = vmatpush1.msra.mxu0 %v2232_v19  ;;  %1676 = vmatpush3.msra.mxu1 %v2269_v30  ;;  %3007 = vst [vmem:[#allocation17_spill] sm:$0xff] %v2334_v47  ;;  %3008 = vst [vmem:[#allocation18_spill] sm:$0xff] %v2340_v48  ;;  %v2414_v53 = vrot.slane %v96_v52, %v104_v51  ;;  %v98_v55 = vld [vmem:[#allocation3] sm:$0xff]  ;;  %v2417_v58 = vrot.slane %v96_v52, %v108_v54  ;;  %v99_v63 = vld [vmem:[#allocation3 + $0x8] sm:$0xff]  ;;  %s1501_s24 = sshll.u32 %s2150_s2, 4  ;;  %s1502_s24 = int_to_ptr.vmem [resolvable:$true] %s1501_s24 }
  0x2e   :  { %133 = vmatprep.subr.mxu0 %v2236_v20  ;;  %1677 = vmatprep.subr.mxu1 %v2977_v0  ;;  %s2118_s25 = scalar_lea.vmem %s1502_s24, 128  ;;  %p2123_p11 = scmp.lt.s32.totalorder %s1502_s24, %s1502_s24 }
  0x2f   :  { %134 = vmatpush1.msra.mxu0 %v2242_v22  ;;  %1678 = vmatpush3.msra.mxu1 %v2279_v33  ;;  %3009 = vst [vmem:[#allocation19_spill] sm:$0xff] %v2414_v53  ;;  %p2119_p10 = scmp.ne.s32.totalorder %s1502_s24, %s2118_s25  ;;  %p2124_p12 = scmp.lt.s32.totalorder %s2118_s25, %s2118_s25 }
  0x30   :  { %135 = vmatprep.subr.mxu0 %v2246_v23  ;;  %1679 = vmatprep.subr.mxu1 %v2977_v0 }
  0x31   :  { %136 = vmatpush1.msra.mxu0 %v2252_v25  ;;  %1680 = vmatpush3.msra.mxu1 %v2289_v36  ;;  %p2125_p13 = por %p2124_p12, %p2123_p11 }
  0x32   :  { %137 = vmatprep.subr.mxu0 %v2256_v26  ;;  %1681 = vmatprep.subr.mxu1 %v2977_v0 }
  0x33   :  { %138 = vmatpush1.msra.mxu0 %v2262_v28  ;;  %1682 = vmatpush3.msra.mxu1 %v2299_v39  ;;  %p2126_p0 = pnand %p2125_p13, %p2119_p10 }
  0x34   :  { %139 = vmatprep.subr.mxu0 %v2266_v29  ;;  %1683 = vmatprep.subr.mxu1 %v2977_v0 }
  0x35   :  { %140 = vmatpush1.msra.mxu0 %v2272_v31  ;;  %1684 = vmatpush3.msra.mxu1 %v2309_v42 }
  0x36   :  { %141 = vmatprep.subr.mxu0 %v2276_v32  ;;  %1685 = vmatprep.subr.mxu1 %v2977_v0 }
  0x37   :  { %142 = vmatpush1.msra.mxu0 %v2282_v34  ;;  %1686 = vmatpush3.msra.mxu1 %v2317_v44 }
  0x38   :  { %143 = vmatprep.subr.mxu0 %v2286_v35  ;;  %1687 = vmatprep.subr.mxu1 %v2977_v0 }
  0x39   :  { %144 = vmatpush1.msra.mxu0 %v2292_v37  ;;  %1688 = vmatpush3.msra.mxu1 %v2323_v45 }
  0x3a   :  { %145 = vmatprep.subr.mxu0 %v2296_v38  ;;  %1689 = vmatprep.subr.mxu1 %v2977_v0 }
  0x3b   :  { %146 = vmatpush1.msra.mxu0 %v2302_v40  ;;  %1690 = vmatpush3.msra.mxu1 %v2328_v46 }
  0x3c   :  { %147 = vmatprep.subr.mxu0 %v2306_v41  ;;  %1691 = vmatprep.subr.mxu1 %v2977_v0 }
  0x3d   :  { %148 = vmatpush1.msra.mxu0 %v2312_v43  ;;  %1692 = vmatpush3.msra.mxu1 %v2334_v47 }
  0x3e   :  { %182 = vmatmul.mubr.f32.vlgmr.msra.gmra.mxu0 %v2977_v0  ;;  %289 = vmatprep.subr.mxu0 %v2181_v1 }
  0x3f   :  { %290 = vmatpush1.msra.mxu0 %v2183_v2  ;;  %1693 = vmatprep.subr.mxu1 %v2977_v0 }
  0x40   :  { %291 = vmatprep.subr.mxu0 %v2185_v3  ;;  %1694 = vmatpush3.msra.mxu1 %v2340_v48 }
  0x41   :  { %292 = vmatpush1.msra.mxu0 %v2188_v4  ;;  %1696 = vmatmul.mubr.f32.vlgmr.msra.gmra.mxu1 %v2977_v0 }
  0x42   :  { %293 = vmatprep.subr.mxu0 %v2191_v5  ;;  %1698 = vmatprep.subr.mxu1 %v2977_v0 }
  0x43   :  { %294 = vmatpush1.msra.mxu0 %v2194_v6  ;;  %1699 = vmatpush3.msra.mxu1 %v2217_v14 }
  0x44   :  { %295 = vmatprep.subr.mxu0 %v2197_v7  ;;  %1700 = vmatprep.subr.mxu1 %v2977_v0 }
  0x45   :  { %296 = vmatpush1.msra.mxu0 %v2200_v8  ;;  %1701 = vmatpush3.msra.mxu1 %v2223_v16 }
  0x46   :  { %297 = vmatprep.subr.mxu0 %v2203_v9  ;;  %1702 = vmatprep.subr.mxu1 %v2977_v0 }
  0x47   :  { %298 = vmatpush1.msra.mxu0 %v2206_v10  ;;  %1703 = vmatpush3.msra.mxu1 %v2229_v18 }
  0x48   :  { %299 = vmatprep.subr.mxu0 %v2209_v11  ;;  %1704 = vmatprep.subr.mxu1 %v2977_v0 }
  0x49   :  { %300 = vmatpush1.msra.mxu0 %v2212_v12  ;;  %1705 = vmatpush3.msra.mxu1 %v2239_v21 }
  0x4a   :  { %301 = vmatprep.subr.mxu0 %v2215_v13  ;;  %1706 = vmatprep.subr.mxu1 %v2977_v0 }
  0x4b   :  { %302 = vmatpush1.msra.mxu0 %v2220_v15  ;;  %1707 = vmatpush3.msra.mxu1 %v2249_v24 }
  0x4c   :  { %303 = vmatprep.subr.mxu0 %v2226_v17  ;;  %1708 = vmatprep.subr.mxu1 %v2977_v0 }
  0x4d   :  { %304 = vmatpush1.msra.mxu0 %v2232_v19  ;;  %1709 = vmatpush3.msra.mxu1 %v2259_v27 }
  0x4e   :  { %305 = vmatprep.subr.mxu0 %v2236_v20  ;;  %1710 = vmatprep.subr.mxu1 %v2977_v0 }
  0x4f   :  { %306 = vmatpush1.msra.mxu0 %v2242_v22  ;;  %1711 = vmatpush3.msra.mxu1 %v2269_v30 }
  0x50   :  { %307 = vmatprep.subr.mxu0 %v2246_v23  ;;  %1712 = vmatprep.subr.mxu1 %v2977_v0 }
  0x51   :  { %308 = vmatpush1.msra.mxu0 %v2252_v25  ;;  %1713 = vmatpush3.msra.mxu1 %v2279_v33 }
  0x52   :  { %309 = vmatprep.subr.mxu0 %v2256_v26  ;;  %1714 = vmatprep.subr.mxu1 %v2977_v0 }
  0x53   :  { %310 = vmatpush1.msra.mxu0 %v2262_v28  ;;  %1715 = vmatpush3.msra.mxu1 %v2289_v36 }
  0x54   :  { %311 = vmatprep.subr.mxu0 %v2266_v29  ;;  %1716 = vmatprep.subr.mxu1 %v2977_v0 }
  0x55   :  { %312 = vmatpush1.msra.mxu0 %v2272_v31  ;;  %1717 = vmatpush3.msra.mxu1 %v2299_v39 }
  0x56   :  { %313 = vmatprep.subr.mxu0 %v2276_v32  ;;  %1718 = vmatprep.subr.mxu1 %v2977_v0 }
  0x57   :  { %314 = vmatpush1.msra.mxu0 %v2282_v34  ;;  %1719 = vmatpush3.msra.mxu1 %v2309_v42 }
  0x58   :  { %315 = vmatprep.subr.mxu0 %v2286_v35  ;;  %1720 = vmatprep.subr.mxu1 %v2977_v0 }
  0x59   :  { %316 = vmatpush1.msra.mxu0 %v2292_v37  ;;  %1721 = vmatpush3.msra.mxu1 %v2317_v44 }
  0x5a   :  { %317 = vmatprep.subr.mxu0 %v2296_v38  ;;  %1722 = vmatprep.subr.mxu1 %v2977_v0 }
  0x5b   :  { %318 = vmatpush1.msra.mxu0 %v2302_v40  ;;  %1723 = vmatpush3.msra.mxu1 %v2323_v45 }
  0x5c   :  { %319 = vmatprep.subr.mxu0 %v2306_v41  ;;  %353 = vmatprep.mubr.f32.mxu0 %v2977_v0  ;;  %v112_v41 = vsub.s32 2, %v103_v50  ;;  %v3013_v50 = vld [vmem:[#allocation16_spill] sm:$0xff] }
  0x5d   :  { %320 = vmatpush1.msra.mxu0 %v2312_v43  ;;  %1724 = vmatprep.subr.mxu1 %v2977_v0 }
  0x5e   :  { %1730 = vmatprep.mubr.msk.f32.mxu1 %vm2149_vm0, %v2977_v0  ;;  %1725 = vmatpush3.msra.mxu1 %v2328_v46 }
  0x5f   :  { %461 = vmatprep.subr.mxu0 %v2181_v1  ;;  %1726 = vmatprep.subr.mxu1 %v2977_v0 }
  0x60   :  { %1727 = vmatpush3.msra.mxu1 %v2334_v47  ;;  %v2420_v47 = vrot.slane %v96_v52, %v112_v41  ;;  %v3011_v41 = vld [vmem:[#allocation17_spill] sm:$0xff]  ;;  %v3014_v52 = vld [vmem:[#allocation18_spill] sm:$0xff] }
  0x61   :  { %1728 = vmatprep.subr.mxu1 %v2977_v0 }
  0x62   :  { %1729 = vmatpush3.msra.mxu1 %v2340_v48 }
  0x63   :  { %1733 = vmatprep.subr.mxu1 %v2977_v0 }
  0xfe   :  { %v183_v56 = vpop.f32.mrf.mxu0 }
  0xff   :  { %v184_v57 = vadd.f32 %v183_v56, %v2414_v53 }
 0x100   :  { %v185_v59 = vpop.f32.mrf.mxu0 }
 0x101   :  { %v258_v60 = vadd.f32 %v184_v57, %v98_v55  ;;  %v186_v62 = vadd.f32 %v185_v59, %v2417_v58  ;;  %v254_v0 = vpop.f32.mrf.mxu1 }
 0x102   :  { %v255_v55 = vadd.f32 %v254_v0, %v2420_v47  ;;  %v3010_v0 = vmov 0.0  }
 0x103   :  { %v1511_v61 = vmul.f32 -1.442695, %v258_v60  ;;  %v265_v49 = vadd.f32 %v186_v62, %v99_v63  ;;  %v1697_v1 = vpop.f32.mrf.mxu1  ;;  %v100_v60 = vld [vmem:[#allocation3 + $0x10] sm:$0xff] }
 0x105   :  { %1950 = vpow2.f32 %v1511_v61  ;;  %v1512_v48 = vmul.f32 -1.442695, %v265_v49 }
 0x107   :  { %1952 = vpow2.f32 %v1512_v48 }
 0x112   :  { %v1951_v51 = vpop.eup %1950 }
 0x113   :  { %v262_v43 = vadd.f32 1.0, %v1951_v51 }
 0x114   :  { %v1953_v54 = vpop.eup %1952 }
 0x115   :  { %1954 = vrcp.f32 %v262_v43  ;;  %v269_v56 = vadd.f32 1.0, %v1953_v54  ;;  %v3012_v43 = vld [vmem:[#allocation15_spill] sm:$0xff]  ;;  %v3015_v54 = vld [vmem:[#allocation12_spill] sm:$0xff] }
 0x117   :  { %1956 = vrcp.f32 %v269_v56  ;;  %v286_v56 = vld [vmem:[#allocation3 + $0x18] sm:$0xff] }
 0x122   :  { %v1955_v57 = vpop.eup %1954 }
 0x123   :  { %v272_v59 = vmul.f32 %v1955_v57, %v255_v55 }
 0x124   :  { %v1957_v62 = vpop.eup %1956 }
 0x125   :  { %v273_v61 = vadd.f32 %v272_v59, %v100_v60  ;;  %v275_v1 = vsub.f32 1.0, %v1957_v62  ;;  %v277_v49 = vmul.f32 0.0, %v1957_v62 }
 0x127   :  { %1958 = vtanh.f32 %v273_v61 }
 0x134   :  { %v1959_v63 = vpop.eup %1958 }
 0x135   :  { %v276_v48 = vmul.f32 %v1959_v63, %v275_v1 }
 0x137   :  { %v2423_v51 = vadd.f32 %v277_v49, %v276_v48  ;;  %v287_v48 = vld [vmem:[#allocation3 + $0x20] sm:$0xff] }
 0x139   :  { %354 = vmatmul.mubr.f32.vlgmr.msra.gmra.mxu0 %v2423_v51  ;;  %1731 = vmatmul.mubr.f32.vlgmr.msra.gmra.mxu1 %v2423_v51 }
 0x13a   :  { %462 = vmatpush1.msra.mxu0 %v2183_v2  ;;  %1734 = vmatpush3.msra.mxu1 %v2217_v14 }
 0x13b   :  { %463 = vmatprep.subr.mxu0 %v2185_v3  ;;  %1735 = vmatprep.subr.mxu1 %v3010_v0 }
 0x13c   :  { %464 = vmatpush1.msra.mxu0 %v2188_v4  ;;  %1736 = vmatpush3.msra.mxu1 %v2223_v16 }
 0x13d   :  { %465 = vmatprep.subr.mxu0 %v2191_v5  ;;  %1737 = vmatprep.subr.mxu1 %v3010_v0 }
 0x13e   :  { %466 = vmatpush1.msra.mxu0 %v2194_v6  ;;  %1738 = vmatpush3.msra.mxu1 %v2229_v18 }
 0x13f   :  { %467 = vmatprep.subr.mxu0 %v2197_v7  ;;  %1739 = vmatprep.subr.mxu1 %v3010_v0 }
 0x140   :  { %468 = vmatpush1.msra.mxu0 %v2200_v8  ;;  %1740 = vmatpush3.msra.mxu1 %v2239_v21 }
 0x141   :  { %469 = vmatprep.subr.mxu0 %v2203_v9  ;;  %1741 = vmatprep.subr.mxu1 %v3010_v0 }
 0x142   :  { %470 = vmatpush1.msra.mxu0 %v2206_v10  ;;  %1742 = vmatpush3.msra.mxu1 %v2249_v24 }
 0x143   :  { %471 = vmatprep.subr.mxu0 %v2209_v11  ;;  %1743 = vmatprep.subr.mxu1 %v3010_v0 }
 0x144   :  { %472 = vmatpush1.msra.mxu0 %v2212_v12  ;;  %1744 = vmatpush3.msra.mxu1 %v2259_v27 }
 0x145   :  { %473 = vmatprep.subr.mxu0 %v2215_v13  ;;  %1745 = vmatprep.subr.mxu1 %v3010_v0 }
 0x146   :  { %474 = vmatpush1.msra.mxu0 %v2220_v15  ;;  %1746 = vmatpush3.msra.mxu1 %v2269_v30 }
 0x147   :  { %475 = vmatprep.subr.mxu0 %v2226_v17  ;;  %1747 = vmatprep.subr.mxu1 %v3010_v0 }
 0x148   :  { %476 = vmatpush1.msra.mxu0 %v2232_v19  ;;  %1748 = vmatpush3.msra.mxu1 %v2279_v33 }
 0x149   :  { %477 = vmatprep.subr.mxu0 %v2236_v20  ;;  %1749 = vmatprep.subr.mxu1 %v3010_v0 }
 0x14a   :  { %478 = vmatpush1.msra.mxu0 %v2242_v22  ;;  %1750 = vmatpush3.msra.mxu1 %v2289_v36 }
 0x14b   :  { %479 = vmatprep.subr.mxu0 %v2246_v23  ;;  %1751 = vmatprep.subr.mxu1 %v3010_v0 }
 0x14c   :  { %480 = vmatpush1.msra.mxu0 %v2252_v25  ;;  %1752 = vmatpush3.msra.mxu1 %v2299_v39 }
 0x14d   :  { %481 = vmatprep.subr.mxu0 %v2256_v26  ;;  %1753 = vmatprep.subr.mxu1 %v3010_v0 }
 0x14e   :  { %482 = vmatpush1.msra.mxu0 %v2262_v28  ;;  %1754 = vmatpush3.msra.mxu1 %v2309_v42 }
 0x14f   :  { %483 = vmatprep.subr.mxu0 %v2266_v29  ;;  %1755 = vmatprep.subr.mxu1 %v3010_v0 }
 0x150   :  { %484 = vmatpush1.msra.mxu0 %v2272_v31  ;;  %1756 = vmatpush3.msra.mxu1 %v2317_v44 }
 0x151   :  { %485 = vmatprep.subr.mxu0 %v2276_v32  ;;  %1757 = vmatprep.subr.mxu1 %v3010_v0 }
 0x152   :  { %486 = vmatpush1.msra.mxu0 %v2282_v34  ;;  %1758 = vmatpush3.msra.mxu1 %v2323_v45 }
 0x153   :  { %487 = vmatprep.subr.mxu0 %v2286_v35  ;;  %1759 = vmatprep.subr.mxu1 %v3010_v0 }
 0x154   :  { %488 = vmatpush1.msra.mxu0 %v2292_v37  ;;  %1760 = vmatpush3.msra.mxu1 %v2328_v46 }
 0x155   :  { %489 = vmatprep.subr.mxu0 %v2296_v38  ;;  %1761 = vmatprep.subr.mxu1 %v3010_v0 }
 0x156   :  { %490 = vmatpush1.msra.mxu0 %v2302_v40  ;;  %1762 = vmatpush3.msra.mxu1 %v3011_v41 }
 0x157   :  { %491 = vmatprep.subr.mxu0 %v3012_v43  ;;  %1763 = vmatprep.subr.mxu1 %v3010_v0 }
 0x158   :  { %492 = vmatpush1.msra.mxu0 %v3013_v50  ;;  %525 = vmatprep.mubr.f32.mxu0 %v3010_v0 }
 0x159   :  { %1764 = vmatpush3.msra.mxu1 %v3014_v52  ;;  %1765 = vmatprep.mubr.msk.f32.mxu1 %vm2149_vm0, %v3010_v0 }
 0x15a   :  { %633 = vmatprep.subr.mxu0 %v3015_v54  ;;  %1768 = vmatprep.subr.mxu1 %v3010_v0 }
 0x1f9   :  { %v355_v55 = vpop.f32.mrf.mxu0  ;;  %v426_v57 = vpop.f32.mrf.mxu1 }
 0x1fa   :  { %v356_v60 = vadd.f32 %v355_v55, %v2414_v53  ;;  %v427_v40 = vadd.f32 %v426_v57, %v2420_v47  ;;  %v288_v55 = vld [vmem:[#allocation3 + $0x28] sm:$0xff] }
 0x1fb   :  { %v357_v59 = vpop.f32.mrf.mxu0  ;;  %v1732_v61 = vpop.f32.mrf.mxu1 }
 0x1fc   :  { %v430_v62 = vadd.f32 %v356_v60, %v286_v56  ;;  %v358_v63 = vadd.f32 %v357_v59, %v2417_v58 }
 0x1fe   :  { %v1513_v1 = vmul.f32 -1.442695, %v430_v62  ;;  %v437_v49 = vadd.f32 %v358_v63, %v287_v48  ;;  %v3023_v48 = vld [vmem:[#allocation19_spill] sm:$0xff] }
 0x200   :  { %1960 = vpow2.f32 %v1513_v1  ;;  %v1514_v52 = vmul.f32 -1.442695, %v437_v49 }
 0x202   :  { %1962 = vpow2.f32 %v1514_v52 }
 0x20d   :  { %v1961_v50 = vpop.eup %1960 }
 0x20e   :  { %v434_v54 = vadd.f32 1.0, %v1961_v50  ;;  %v3022_v50 = vld [vmem:[#allocation12_spill] sm:$0xff] }
 0x20f   :  { %v1963_v43 = vpop.eup %1962 }
 0x210   :  { %1964 = vrcp.f32 %v434_v54  ;;  %v441_v41 = vadd.f32 1.0, %v1963_v43  ;;  %v3021_v43 = vld [vmem:[#allocation18_spill] sm:$0xff]  ;;  %v458_v54 = vld [vmem:[#allocation3 + $0x30] sm:$0xff] }
 0x212   :  { %1966 = vrcp.f32 %v441_v41  ;;  %v3020_v41 = vld [vmem:[#allocation16_spill] sm:$0xff] }
 0x21d   :  { %v1965_v38 = vpop.eup %1964 }
 0x21e   :  { %v444_v53 = vmul.f32 %v1965_v38, %v427_v40  ;;  %v3016_v38 = vld [vmem:[#allocation13_spill] sm:$0xff]  ;;  %v3017_v40 = vld [vmem:[#allocation14_spill] sm:$0xff] }
 0x21f   :  { %v1967_v60 = vpop.eup %1966 }
 0x220   :  { %v445_v56 = vadd.f32 %v444_v53, %v288_v55  ;;  %v447_v59 = vsub.f32 1.0, %v1967_v60  ;;  %v449_v1 = vmul.f32 %v1967_v60, %v2423_v51  ;;  %v3018_v53 = vld [vmem:[#allocation17_spill] sm:$0xff]  ;;  %v3019_v51 = vld [vmem:[#allocation15_spill] sm:$0xff] }
 0x222   :  { %1968 = vtanh.f32 %v445_v56 }
 0x22f   :  { %v1969_v61 = vpop.eup %1968 }
 0x230   :  { %v448_v62 = vmul.f32 %v1969_v61, %v447_v59 }
 0x232   :  { %v2498_v52 = vadd.f32 %v449_v1, %v448_v62  ;;  %v459_v62 = vld [vmem:[#allocation3 + $0x38] sm:$0xff] }
 0x234   :  { %526 = vmatmul.mubr.f32.vlgmr.msra.gmra.mxu0 %v2498_v52  ;;  %1766 = vmatmul.mubr.f32.vlgmr.msra.gmra.mxu1 %v2498_v52 }
 0x235   :  { %634 = vmatpush1.msra.mxu0 %v2183_v2  ;;  %1769 = vmatpush3.msra.mxu1 %v2217_v14 }
 0x236   :  { %635 = vmatprep.subr.mxu0 %v2185_v3  ;;  %1770 = vmatprep.subr.mxu1 %v3010_v0 }
 0x237   :  { %636 = vmatpush1.msra.mxu0 %v2188_v4  ;;  %1771 = vmatpush3.msra.mxu1 %v2223_v16 }
 0x238   :  { %637 = vmatprep.subr.mxu0 %v2191_v5  ;;  %1772 = vmatprep.subr.mxu1 %v3010_v0 }
 0x239   :  { %638 = vmatpush1.msra.mxu0 %v2194_v6  ;;  %1773 = vmatpush3.msra.mxu1 %v2229_v18 }
 0x23a   :  { %639 = vmatprep.subr.mxu0 %v2197_v7  ;;  %1774 = vmatprep.subr.mxu1 %v3010_v0 }
 0x23b   :  { %640 = vmatpush1.msra.mxu0 %v2200_v8  ;;  %1775 = vmatpush3.msra.mxu1 %v2239_v21 }
 0x23c   :  { %641 = vmatprep.subr.mxu0 %v2203_v9  ;;  %1776 = vmatprep.subr.mxu1 %v3010_v0 }
 0x23d   :  { %642 = vmatpush1.msra.mxu0 %v2206_v10  ;;  %1777 = vmatpush3.msra.mxu1 %v2249_v24 }
 0x23e   :  { %643 = vmatprep.subr.mxu0 %v2209_v11  ;;  %1778 = vmatprep.subr.mxu1 %v3010_v0 }
 0x23f   :  { %644 = vmatpush1.msra.mxu0 %v2212_v12  ;;  %1779 = vmatpush3.msra.mxu1 %v2259_v27 }
 0x240   :  { %645 = vmatprep.subr.mxu0 %v2215_v13  ;;  %1780 = vmatprep.subr.mxu1 %v3010_v0 }
 0x241   :  { %646 = vmatpush1.msra.mxu0 %v2220_v15  ;;  %1781 = vmatpush3.msra.mxu1 %v2269_v30 }
 0x242   :  { %647 = vmatprep.subr.mxu0 %v2226_v17  ;;  %1782 = vmatprep.subr.mxu1 %v3010_v0 }
 0x243   :  { %648 = vmatpush1.msra.mxu0 %v2232_v19  ;;  %1783 = vmatpush3.msra.mxu1 %v2279_v33 }
 0x244   :  { %649 = vmatprep.subr.mxu0 %v2236_v20  ;;  %1784 = vmatprep.subr.mxu1 %v3010_v0 }
 0x245   :  { %650 = vmatpush1.msra.mxu0 %v2242_v22  ;;  %1785 = vmatpush3.msra.mxu1 %v2289_v36 }
 0x246   :  { %651 = vmatprep.subr.mxu0 %v2246_v23  ;;  %1786 = vmatprep.subr.mxu1 %v3010_v0 }
 0x247   :  { %652 = vmatpush1.msra.mxu0 %v2252_v25  ;;  %1787 = vmatpush3.msra.mxu1 %v2299_v39 }
 0x248   :  { %653 = vmatprep.subr.mxu0 %v2256_v26  ;;  %1788 = vmatprep.subr.mxu1 %v3010_v0 }
 0x249   :  { %654 = vmatpush1.msra.mxu0 %v2262_v28  ;;  %1789 = vmatpush3.msra.mxu1 %v2309_v42 }
 0x24a   :  { %655 = vmatprep.subr.mxu0 %v2266_v29  ;;  %1790 = vmatprep.subr.mxu1 %v3010_v0 }
 0x24b   :  { %656 = vmatpush1.msra.mxu0 %v2272_v31  ;;  %1791 = vmatpush3.msra.mxu1 %v2317_v44 }
 0x24c   :  { %657 = vmatprep.subr.mxu0 %v2276_v32  ;;  %1792 = vmatprep.subr.mxu1 %v3010_v0 }
 0x24d   :  { %658 = vmatpush1.msra.mxu0 %v2282_v34  ;;  %1793 = vmatpush3.msra.mxu1 %v2323_v45 }
 0x24e   :  { %659 = vmatprep.subr.mxu0 %v2286_v35  ;;  %1794 = vmatprep.subr.mxu1 %v3010_v0 }
 0x24f   :  { %660 = vmatpush1.msra.mxu0 %v2292_v37  ;;  %1795 = vmatpush3.msra.mxu1 %v2328_v46 }
 0x250   :  { %661 = vmatprep.subr.mxu0 %v3016_v38  ;;  %1796 = vmatprep.subr.mxu1 %v3010_v0 }
 0x251   :  { %662 = vmatpush1.msra.mxu0 %v3017_v40  ;;  %1797 = vmatpush3.msra.mxu1 %v3018_v53 }
 0x252   :  { %663 = vmatprep.subr.mxu0 %v3019_v51  ;;  %1798 = vmatprep.subr.mxu1 %v3010_v0 }
 0x253   :  { %664 = vmatpush1.msra.mxu0 %v3020_v41  ;;  %697 = vmatprep.mubr.f32.mxu0 %v3010_v0 }
 0x254   :  { %1799 = vmatpush3.msra.mxu1 %v3021_v43  ;;  %1800 = vmatprep.mubr.msk.f32.mxu1 %vm2149_vm0, %v3010_v0 }
 0x255   :  { %805 = vmatprep.subr.mxu0 %v3022_v50  ;;  %1803 = vmatprep.subr.mxu1 %v3010_v0 }
 0x2f4   :  { %v527_v57 = vpop.f32.mrf.mxu0  ;;  %v598_v63 = vpop.f32.mrf.mxu1 }
 0x2f5   :  { %v528_v49 = vadd.f32 %v527_v57, %v3023_v48  ;;  %v599_v40 = vadd.f32 %v598_v63, %v2420_v47  ;;  %v460_v57 = vld [vmem:[#allocation3 + $0x40] sm:$0xff] }
 0x2f6   :  { %v529_v55 = vpop.f32.mrf.mxu0  ;;  %v1767_v56 = vpop.f32.mrf.mxu1 }
 0x2f7   :  { %v602_v60 = vadd.f32 %v528_v49, %v458_v54  ;;  %v530_v61 = vadd.f32 %v529_v55, %v2417_v58 }
 0x2f9   :  { %v1515_v59 = vmul.f32 -1.442695, %v602_v60  ;;  %v609_v1 = vadd.f32 %v530_v61, %v459_v62 }
 0x2fb   :  { %1970 = vpow2.f32 %v1515_v59  ;;  %v1516_v43 = vmul.f32 -1.442695, %v609_v1 }
 0x2fd   :  { %1972 = vpow2.f32 %v1516_v43 }
 0x308   :  { %v1971_v41 = vpop.eup %1970 }
 0x309   :  { %v606_v50 = vadd.f32 1.0, %v1971_v41 }
 0x30a   :  { %v1973_v51 = vpop.eup %1972 }
 0x30b   :  { %1974 = vrcp.f32 %v606_v50  ;;  %v613_v53 = vadd.f32 1.0, %v1973_v51  ;;  %v632_v50 = vld [vmem:[#allocation3 + $0x58] sm:$0xff] }
 0x30d   :  { %1976 = vrcp.f32 %v613_v53 }
 0x318   :  { %v1975_v38 = vpop.eup %1974 }
 0x319   :  { %v616_v48 = vmul.f32 %v1975_v38, %v599_v40 }
 0x31a   :  { %v1977_v49 = vpop.eup %1976 }
 0x31b   :  { %v617_v54 = vadd.f32 %v616_v48, %v460_v57  ;;  %v619_v55 = vsub.f32 1.0, %v1977_v49  ;;  %v621_v59 = vmul.f32 %v1977_v49, %v2498_v52 }
 0x31d   :  { %1978 = vtanh.f32 %v617_v54 }
 0x32a   :  { %v1979_v56 = vpop.eup %1978 }
 0x32b   :  { %v620_v60 = vmul.f32 %v1979_v56, %v619_v55  ;;  %v2652_v55 = vld [vmem:[#allocation6 + $0x168] sm:$0xff]  ;;  %v2656_v56 = vld [vmem:[#allocation6 + $0x158] sm:$0xff] }
 0x32d   :  { %v2573_v43 = vadd.f32 %v621_v59, %v620_v60  ;;  %v2660_v60 = vld [vmem:[#allocation6 + $0x150] sm:$0xff]  ;;  %v2664_v59 = vld [vmem:[#allocation6 + $0x140] sm:$0xff] }
 0x32f   :  { %698 = vmatmul.mubr.f32.vlgmr.msra.gmra.mxu0 %v2573_v43  ;;  %1801 = vmatmul.mubr.f32.vlgmr.msra.gmra.mxu1 %v2573_v43 }
 0x330   :  { %806 = vmatpush1.msra.mxu0 %v2183_v2  ;;  %1804 = vmatpush3.msra.mxu1 %v2217_v14  ;;  %v3024_v2 = vld [vmem:[#allocation13_spill] sm:$0xff] }
 0x331   :  { %807 = vmatprep.subr.mxu0 %v2185_v3  ;;  %1805 = vmatprep.subr.mxu1 %v3010_v0  ;;  %v3025_v3 = vld [vmem:[#allocation14_spill] sm:$0xff] }
 0x332   :  { %808 = vmatpush1.msra.mxu0 %v2188_v4  ;;  %1806 = vmatpush3.msra.mxu1 %v2223_v16  ;;  %v3026_v4 = vld [vmem:[#allocation17_spill] sm:$0xff] }
 0x333   :  { %809 = vmatprep.subr.mxu0 %v2191_v5  ;;  %1807 = vmatprep.subr.mxu1 %v3010_v0  ;;  %v3027_v5 = vld [vmem:[#allocation15_spill] sm:$0xff] }
 0x334   :  { %810 = vmatpush1.msra.mxu0 %v2194_v6  ;;  %1808 = vmatpush3.msra.mxu1 %v2229_v18  ;;  %v3028_v6 = vld [vmem:[#allocation16_spill] sm:$0xff] }
 0x335   :  { %811 = vmatprep.subr.mxu0 %v2197_v7  ;;  %1809 = vmatprep.subr.mxu1 %v3010_v0  ;;  %v3029_v7 = vld [vmem:[#allocation18_spill] sm:$0xff] }
 0x336   :  { %812 = vmatpush1.msra.mxu0 %v2200_v8  ;;  %1810 = vmatpush3.msra.mxu1 %v2239_v21  ;;  %v3030_v8 = vld [vmem:[#allocation12_spill] sm:$0xff] }
 0x337   :  { %813 = vmatprep.subr.mxu0 %v2203_v9  ;;  %1811 = vmatprep.subr.mxu1 %v3010_v0  ;;  %v630_v9 = vld [vmem:[#allocation3 + $0x48] sm:$0xff] }
 0x338   :  { %814 = vmatpush1.msra.mxu0 %v2206_v10  ;;  %1812 = vmatpush3.msra.mxu1 %v2249_v24 }
 0x339   :  { %815 = vmatprep.subr.mxu0 %v2209_v11  ;;  %1813 = vmatprep.subr.mxu1 %v3010_v0 }
 0x33a   :  { %816 = vmatpush1.msra.mxu0 %v2212_v12  ;;  %1814 = vmatpush3.msra.mxu1 %v2259_v27  ;;  %v3031_v12 = vld [vmem:[#allocation19_spill] sm:$0xff] }
 0x33b   :  { %817 = vmatprep.subr.mxu0 %v2215_v13  ;;  %1815 = vmatprep.subr.mxu1 %v3010_v0 }
 0x33c   :  { %818 = vmatpush1.msra.mxu0 %v2220_v15  ;;  %1816 = vmatpush3.msra.mxu1 %v2269_v30 }
 0x33d   :  { %819 = vmatprep.subr.mxu0 %v2226_v17  ;;  %1817 = vmatprep.subr.mxu1 %v3010_v0 }
 0x33e   :  { %820 = vmatpush1.msra.mxu0 %v2232_v19  ;;  %1818 = vmatpush3.msra.mxu1 %v2279_v33 }
 0x33f   :  { %821 = vmatprep.subr.mxu0 %v2236_v20  ;;  %1819 = vmatprep.subr.mxu1 %v3010_v0 }
 0x340   :  { %822 = vmatpush1.msra.mxu0 %v2242_v22  ;;  %1820 = vmatpush3.msra.mxu1 %v2289_v36 }
 0x341   :  { %823 = vmatprep.subr.mxu0 %v2246_v23  ;;  %1821 = vmatprep.subr.mxu1 %v3010_v0  ;;  %v631_v23 = vld [vmem:[#allocation3 + $0x50] sm:$0xff] }
 0x342   :  { %824 = vmatpush1.msra.mxu0 %v2252_v25  ;;  %1822 = vmatpush3.msra.mxu1 %v2299_v39 }
 0x343   :  { %825 = vmatprep.subr.mxu0 %v2256_v26  ;;  %1823 = vmatprep.subr.mxu1 %v3010_v0 }
 0x344   :  { %826 = vmatpush1.msra.mxu0 %v2262_v28  ;;  %1824 = vmatpush3.msra.mxu1 %v2309_v42 }
 0x345   :  { %827 = vmatprep.subr.mxu0 %v2266_v29  ;;  %1825 = vmatprep.subr.mxu1 %v3010_v0 }
 0x346   :  { %828 = vmatpush1.msra.mxu0 %v2272_v31  ;;  %1826 = vmatpush3.msra.mxu1 %v2317_v44 }
 0x347   :  { %829 = vmatprep.subr.mxu0 %v2276_v32  ;;  %1827 = vmatprep.subr.mxu1 %v3010_v0 }
 0x348   :  { %830 = vmatpush1.msra.mxu0 %v2282_v34  ;;  %1828 = vmatpush3.msra.mxu1 %v2323_v45 }
 0x349   :  { %831 = vmatprep.subr.mxu0 %v2286_v35  ;;  %1829 = vmatprep.subr.mxu1 %v3010_v0 }
 0x34a   :  { %832 = vmatpush1.msra.mxu0 %v2292_v37  ;;  %1830 = vmatpush3.msra.mxu1 %v2328_v46 }
 0x34b   :  { %833 = vmatprep.subr.mxu0 %v3024_v2  ;;  %1831 = vmatprep.subr.mxu1 %v3010_v0 }
 0x34c   :  { %834 = vmatpush1.msra.mxu0 %v3025_v3  ;;  %1832 = vmatpush3.msra.mxu1 %v3026_v4 }
 0x34d   :  { %835 = vmatprep.subr.mxu0 %v3027_v5  ;;  %1833 = vmatprep.subr.mxu1 %v3010_v0 }
 0x34e   :  { %836 = vmatpush1.msra.mxu0 %v3028_v6  ;;  %869 = vmatprep.mubr.f32.mxu0 %v3010_v0 }
 0x34f   :  { %1834 = vmatpush3.msra.mxu1 %v3029_v7  ;;  %1835 = vmatprep.mubr.msk.f32.mxu1 %vm2149_vm0, %v3010_v0 }
 0x350   :  { %977 = vmatprep.subr.mxu0 %v3030_v8  ;;  %1838 = vmatprep.subr.mxu1 %v3010_v0  ;;  %v2676_v8 = vld [vmem:[#allocation6 + $0x120] sm:$0xff] }
 0x3ef   :  { %v699_v10 = vpop.f32.mrf.mxu0  ;;  %v770_v11 = vpop.f32.mrf.mxu1 }
 0x3f0   :  { %v700_v13 = vadd.f32 %v699_v10, %v3031_v12  ;;  %v771_v51 = vadd.f32 %v770_v11, %v2420_v47  ;;  %v2692_v10 = vld [vmem:[#allocation6 + $0xf0] sm:$0xff]  ;;  %v2700_v11 = vld [vmem:[#allocation6 + $0xd8] sm:$0xff] }
 0x3f1   :  { %v701_v15 = vpop.f32.mrf.mxu0  ;;  %v1802_v17 = vpop.f32.mrf.mxu1 }
 0x3f2   :  { %v774_v19 = vadd.f32 %v700_v13, %v630_v9  ;;  %v702_v22 = vadd.f32 %v701_v15, %v2417_v58  ;;  %v2684_v9 = vld [vmem:[#allocation6 + $0x108] sm:$0xff]  ;;  %v2708_v13 = vld [vmem:[#allocation6 + $0xc0] sm:$0xff]  ;;  %v2724_v17 = vld [vmem:[#allocation6 + $0x90] sm:$0xff] }
 0x3f3   :  { %v2716_v15 = vld [vmem:[#allocation6 + $0xa8] sm:$0xff] }
 0x3f4   :  { %v1517_v20 = vmul.f32 -1.442695, %v774_v19  ;;  %v781_v25 = vadd.f32 %v702_v22, %v631_v23  ;;  %v804_v19 = vld [vmem:[#allocation3 + $0x70] sm:$0xff] }
 0x3f6   :  { %1980 = vpow2.f32 %v1517_v20  ;;  %v1518_v26 = vmul.f32 -1.442695, %v781_v25 }
 0x3f8   :  { %1982 = vpow2.f32 %v1518_v26 }
 0x403   :  { %v1981_v52 = vpop.eup %1980 }
 0x404   :  { %v778_v38 = vadd.f32 1.0, %v1981_v52 }
 0x405   :  { %v1983_v40 = vpop.eup %1982 }
 0x406   :  { %1984 = vrcp.f32 %v778_v38  ;;  %v785_v53 = vadd.f32 1.0, %v1983_v40 }
 0x408   :  { %1986 = vrcp.f32 %v785_v53  ;;  %v2770_v53 = vld [vmem:[#allocation6 + $0x178] sm:$0xff] }
 0x413   :  { %v1985_v41 = vpop.eup %1984 }
 0x414   :  { %v788_v63 = vmul.f32 %v1985_v41, %v771_v51  ;;  %v2776_v51 = vld [vmem:[#allocation6 + $0x160] sm:$0xff]  ;;  %v2782_v41 = vld [vmem:[#allocation6 + $0x148] sm:$0xff] }
 0x415   :  { %v1987_v61 = vpop.eup %1986 }
 0x416   :  { %v789_v48 = vadd.f32 %v788_v63, %v632_v50  ;;  %v791_v62 = vsub.f32 1.0, %v1987_v61  ;;  %v793_v54 = vmul.f32 %v1987_v61, %v2573_v43  ;;  %v2668_v43 = vld [vmem:[#allocation6 + $0x138] sm:$0xff]  ;;  %v2788_v50 = vld [vmem:[#allocation6 + $0x130] sm:$0xff]  ;;  %v2806_v61 = vld [vmem:[#allocation6 + $0xe8] sm:$0xff] }
 0x417   :  { %v2794_v63 = vld [vmem:[#allocation6 + $0x118] sm:$0xff] }
 0x418   :  { %1988 = vtanh.f32 %v789_v48  ;;  %v2800_v48 = vld [vmem:[#allocation6 + $0x100] sm:$0xff] }
 0x425   :  { %v1989_v1 = vpop.eup %1988 }
 0x426   :  { %v792_v57 = vmul.f32 %v1989_v1, %v791_v62  ;;  %v2812_v62 = vld [vmem:[#allocation6 + $0xd0] sm:$0xff]  ;;  %v2818_v1 = vld [vmem:[#allocation6 + $0xb8] sm:$0xff] }
 0x428   :  { %v2648_v49 = vadd.f32 %v793_v54, %v792_v57  ;;  %v2824_v57 = vld [vmem:[#allocation6 + $0xa0] sm:$0xff]  ;;  %v2829_v54 = vld [vmem:[#allocation6 + $0x78] sm:$0xff] }
 0x42a   :  { %870 = vmatmul.mubr.f32.vlgmr.msra.gmra.mxu0 %v2648_v49  ;;  %1836 = vmatmul.mubr.f32.vlgmr.msra.gmra.mxu1 %v2648_v49 }
 0x42b   :  { %978 = vmatpush1.msra.mxu0 %v2652_v55  ;;  %1839 = vmatpush3.msra.mxu1 %v2217_v14  ;;  %v2672_v14 = vld [vmem:[#allocation6 + $0x128] sm:$0xff] }
 0x42c   :  { %979 = vmatprep.subr.mxu0 %v2656_v56  ;;  %1840 = vmatprep.subr.mxu1 %v3010_v0 }
 0x42d   :  { %980 = vmatpush1.msra.mxu0 %v2660_v60  ;;  %1841 = vmatpush3.msra.mxu1 %v2223_v16  ;;  %v2680_v16 = vld [vmem:[#allocation6 + $0x110] sm:$0xff] }
 0x42e   :  { %981 = vmatprep.subr.mxu0 %v2664_v59  ;;  %1842 = vmatprep.subr.mxu1 %v3010_v0 }
 0x42f   :  { %982 = vmatpush1.msra.mxu0 %v2668_v43  ;;  %1843 = vmatpush3.msra.mxu1 %v2229_v18  ;;  %v2688_v18 = vld [vmem:[#allocation6 + $0xf8] sm:$0xff] }
 0x430   :  { %983 = vmatprep.subr.mxu0 %v2672_v14  ;;  %1844 = vmatprep.subr.mxu1 %v3010_v0 }
 0x431   :  { %984 = vmatpush1.msra.mxu0 %v2676_v8  ;;  %1845 = vmatpush3.msra.mxu1 %v2239_v21  ;;  %v2696_v21 = vld [vmem:[#allocation6 + $0xe0] sm:$0xff] }
 0x432   :  { %985 = vmatprep.subr.mxu0 %v2680_v16  ;;  %1846 = vmatprep.subr.mxu1 %v3010_v0 }
 0x433   :  { %986 = vmatpush1.msra.mxu0 %v2684_v9  ;;  %1847 = vmatpush3.msra.mxu1 %v2249_v24  ;;  %v2704_v24 = vld [vmem:[#allocation6 + $0xc8] sm:$0xff] }
 0x434   :  { %987 = vmatprep.subr.mxu0 %v2688_v18  ;;  %1848 = vmatprep.subr.mxu1 %v3010_v0 }
 0x435   :  { %988 = vmatpush1.msra.mxu0 %v2692_v10  ;;  %1849 = vmatpush3.msra.mxu1 %v2259_v27  ;;  %v2712_v27 = vld [vmem:[#allocation6 + $0xb0] sm:$0xff] }
 0x436   :  { %989 = vmatprep.subr.mxu0 %v2696_v21  ;;  %1850 = vmatprep.subr.mxu1 %v3010_v0 }
 0x437   :  { %990 = vmatpush1.msra.mxu0 %v2700_v11  ;;  %1851 = vmatpush3.msra.mxu1 %v2269_v30  ;;  %v2720_v30 = vld [vmem:[#allocation6 + $0x98] sm:$0xff] }
 0x438   :  { %991 = vmatprep.subr.mxu0 %v2704_v24  ;;  %1852 = vmatprep.subr.mxu1 %v3010_v0 }
 0x439   :  { %992 = vmatpush1.msra.mxu0 %v2708_v13  ;;  %1853 = vmatpush3.msra.mxu1 %v2279_v33  ;;  %v2728_v33 = vld [vmem:[#allocation6 + $0x80] sm:$0xff] }
 0x43a   :  { %993 = vmatprep.subr.mxu0 %v2712_v27  ;;  %1854 = vmatprep.subr.mxu1 %v3010_v0 }
 0x43b   :  { %994 = vmatpush1.msra.mxu0 %v2716_v15  ;;  %1855 = vmatpush3.msra.mxu1 %v2289_v36 }
 0x43c   :  { %995 = vmatprep.subr.mxu0 %v2720_v30  ;;  %1856 = vmatprep.subr.mxu1 %v3010_v0 }
 0x43d   :  { %996 = vmatpush1.msra.mxu0 %v2724_v17  ;;  %1857 = vmatpush3.msra.mxu1 %v2299_v39 }
 0x43e   :  { %997 = vmatprep.subr.mxu0 %v2728_v33  ;;  %1858 = vmatprep.subr.mxu1 %v3010_v0 }
 0x43f   :  { %998 = vmatpush1.msra.mxu0 %v2262_v28  ;;  %1859 = vmatpush3.msra.mxu1 %v2309_v42  ;;  %v2757_v28 = vld [vmem:[#allocation6 + $0x170] sm:$0xff] }
 0x440   :  { %999 = vmatprep.subr.mxu0 %v2266_v29  ;;  %1860 = vmatprep.subr.mxu1 %v3010_v0  ;;  %v802_v29 = vld [vmem:[#allocation3 + $0x60] sm:$0xff] }
 0x441   :  { %1000 = vmatpush1.msra.mxu0 %v2272_v31  ;;  %1861 = vmatpush3.msra.mxu1 %v2317_v44  ;;  %v803_v44 = vld [vmem:[#allocation3 + $0x68] sm:$0xff] }
 0x442   :  { %1001 = vmatprep.subr.mxu0 %v2276_v32  ;;  %1862 = vmatprep.subr.mxu1 %v3010_v0 }
 0x443   :  { %1002 = vmatpush1.msra.mxu0 %v2282_v34  ;;  %1863 = vmatpush3.msra.mxu1 %v2323_v45 }
 0x444   :  { %1003 = vmatprep.subr.mxu0 %v2286_v35  ;;  %1864 = vmatprep.subr.mxu1 %v3010_v0 }
 0x445   :  { %1004 = vmatpush1.msra.mxu0 %v2292_v37  ;;  %1865 = vmatpush3.msra.mxu1 %v2328_v46 }
 0x446   :  { %1005 = vmatprep.subr.mxu0 %v3024_v2  ;;  %1866 = vmatprep.subr.mxu1 %v3010_v0 }
 0x447   :  { %1006 = vmatpush1.msra.mxu0 %v3025_v3  ;;  %1867 = vmatpush3.msra.mxu1 %v3026_v4 }
 0x448   :  { %1007 = vmatprep.subr.mxu0 %v3027_v5  ;;  %1868 = vmatprep.subr.mxu1 %v3010_v0 }
 0x449   :  { %1008 = vmatpush1.msra.mxu0 %v3028_v6  ;;  %1041 = vmatprep.mubr.f32.mxu0 %v3010_v0 }
 0x44a   :  { %1869 = vmatpush3.msra.mxu1 %v3029_v7  ;;  %1870 = vmatprep.mubr.msk.f32.mxu1 %vm2149_vm0, %v3010_v0 }
 0x44b   :  { %1149 = vmatprep.subr.mxu0 %v2757_v28  ;;  %1873 = vmatprep.subr.mxu1 %v3010_v0 }
 0x4ea   :  { %v871_v31 = vpop.f32.mrf.mxu0  ;;  %v942_v32 = vpop.f32.mrf.mxu1 }
 0x4eb   :  { %v872_v34 = vadd.f32 %v871_v31, %v3031_v12  ;;  %v943_v6 = vadd.f32 %v942_v32, %v2420_v47  ;;  %v2839_v31 = vld [vmem:[#allocation6 + $0x60] sm:$0xff]  ;;  %v2842_v32 = vld [vmem:[#allocation6 + $0x70] sm:$0xff] }
 0x4ec   :  { %v873_v35 = vpop.f32.mrf.mxu0  ;;  %v1837_v36 = vpop.f32.mrf.mxu1 }
 0x4ed   :  { %v946_v37 = vadd.f32 %v872_v34, %v802_v29  ;;  %v874_v42 = vadd.f32 %v873_v35, %v2417_v58  ;;  %v2835_v29 = vld [vmem:[#allocation6 + $0x68] sm:$0xff]  ;;  %v2845_v34 = vld [vmem:[#allocation6 + $0x50] sm:$0xff]  ;;  %v2852_v36 = vld [vmem:[#allocation6 + $0x58] sm:$0xff] }
 0x4ee   :  { %v2849_v35 = vld [vmem:[#allocation6 + $0x48] sm:$0xff] }
 0x4ef   :  { %v1519_v39 = vmul.f32 -1.442695, %v946_v37  ;;  %v953_v45 = vadd.f32 %v874_v42, %v803_v44  ;;  %v2855_v37 = vld [vmem:[#allocation6 + $0x38] sm:$0xff]  ;;  %v2862_v42 = vld [vmem:[#allocation6 + $0x40] sm:$0xff] }
 0x4f0   :  { %v2865_v44 = vld [vmem:[#allocation6 + $0x20] sm:$0xff] }
 0x4f1   :  { %1990 = vpow2.f32 %v1519_v39  ;;  %v1520_v46 = vmul.f32 -1.442695, %v953_v45  ;;  %v2859_v39 = vld [vmem:[#allocation6 + $0x30] sm:$0xff]  ;;  %3032 = vst [vmem:[#allocation13_spill] sm:$0xff] %v2865_v44  ;;  %v2869_v45 = vld [vmem:[#allocation6 + $0x18] sm:$0xff] }
 0x4f2   :  { %3033 = vst [vmem:[#allocation14_spill] sm:$0xff] %v2869_v45 }
 0x4f3   :  { %1992 = vpow2.f32 %v1520_v46  ;;  %v2872_v46 = vld [vmem:[#allocation6 + $0x28] sm:$0xff] }
 0x4f4   :  { %3034 = vst [vmem:[#allocation17_spill] sm:$0xff] %v2872_v46 }
 0x4fe   :  { %v1991_v2 = vpop.eup %1990 }
 0x4ff   :  { %v950_v3 = vadd.f32 1.0, %v1991_v2  ;;  %v2875_v2 = vld [vmem:[#allocation6 + $0x8] sm:$0xff] }
 0x500   :  { %v1993_v4 = vpop.eup %1992  ;;  %3035 = vst [vmem:[#allocation15_spill] sm:$0xff] %v2875_v2 }
 0x501   :  { %1994 = vrcp.f32 %v950_v3  ;;  %v957_v5 = vadd.f32 1.0, %v1993_v4  ;;  %v2879_v3 = vld [vmem:[#allocation6] sm:$0xff]  ;;  %v2883_v4 = vld [vmem:[#allocation6 + $0x10] sm:$0xff] }
 0x502   :  { %3036 = vst [vmem:[#allocation16_spill] sm:$0xff] %v2879_v3  ;;  %3037 = vst [vmem:[#allocation18_spill] sm:$0xff] %v2883_v4 }
 0x503   :  { %1996 = vrcp.f32 %v957_v5  ;;  %v974_v5 = vld [vmem:[#allocation3 + $0x78] sm:$0xff] }
 0x50e   :  { %v1995_v7 = vpop.eup %1994 }
 0x50f   :  { %v960_v20 = vmul.f32 %v1995_v7, %v943_v6 }
 0x510   :  { %v1997_v23 = vpop.eup %1996 }
 0x511   :  { %v961_v22 = vadd.f32 %v960_v20, %v804_v19  ;;  %v963_v25 = vsub.f32 1.0, %v1997_v23  ;;  %v965_v38 = vmul.f32 %v1997_v23, %v2648_v49  ;;  %v2832_v49 = vld [vmem:[#allocation6 + $0x88] sm:$0xff] }
 0x513   :  { %1998 = vtanh.f32 %v961_v22 }
 0x520   :  { %v1999_v26 = vpop.eup %1998 }
 0x521   :  { %v964_v52 = vmul.f32 %v1999_v26, %v963_v25 }
 0x523   :  { %v2765_v40 = vadd.f32 %v965_v38, %v964_v52  ;;  %v975_v52 = vld [vmem:[#allocation3 + $0x80] sm:$0xff] }
 0x525   :  { %1042 = vmatmul.mubr.f32.vlgmr.msra.gmra.mxu0 %v2765_v40  ;;  %1871 = vmatmul.mubr.f32.vlgmr.msra.gmra.mxu1 %v2765_v40 }
 0x526   :  { %1150 = vmatpush1.msra.mxu0 %v2652_v55  ;;  %1874 = vmatpush3.msra.mxu1 %v2770_v53 }
 0x527   :  { %1151 = vmatprep.subr.mxu0 %v2656_v56  ;;  %1875 = vmatprep.subr.mxu1 %v3010_v0 }
 0x528   :  { %1152 = vmatpush1.msra.mxu0 %v2660_v60  ;;  %1876 = vmatpush3.msra.mxu1 %v2776_v51 }
 0x529   :  { %1153 = vmatprep.subr.mxu0 %v2664_v59  ;;  %1877 = vmatprep.subr.mxu1 %v3010_v0 }
 0x52a   :  { %1154 = vmatpush1.msra.mxu0 %v2668_v43  ;;  %1878 = vmatpush3.msra.mxu1 %v2782_v41 }
 0x52b   :  { %1155 = vmatprep.subr.mxu0 %v2672_v14  ;;  %1879 = vmatprep.subr.mxu1 %v3010_v0 }
 0x52c   :  { %1156 = vmatpush1.msra.mxu0 %v2676_v8  ;;  %1880 = vmatpush3.msra.mxu1 %v2788_v50 }
 0x52d   :  { %1157 = vmatprep.subr.mxu0 %v2680_v16  ;;  %1881 = vmatprep.subr.mxu1 %v3010_v0 }
 0x52e   :  { %1158 = vmatpush1.msra.mxu0 %v2684_v9  ;;  %1882 = vmatpush3.msra.mxu1 %v2794_v63 }
 0x52f   :  { %1159 = vmatprep.subr.mxu0 %v2688_v18  ;;  %1883 = vmatprep.subr.mxu1 %v3010_v0 }
 0x530   :  { %1160 = vmatpush1.msra.mxu0 %v2692_v10  ;;  %1884 = vmatpush3.msra.mxu1 %v2800_v48 }
 0x531   :  { %1161 = vmatprep.subr.mxu0 %v2696_v21  ;;  %1885 = vmatprep.subr.mxu1 %v3010_v0 }
 0x532   :  { %1162 = vmatpush1.msra.mxu0 %v2700_v11  ;;  %1886 = vmatpush3.msra.mxu1 %v2806_v61 }
 0x533   :  { %1163 = vmatprep.subr.mxu0 %v2704_v24  ;;  %1887 = vmatprep.subr.mxu1 %v3010_v0 }
 0x534   :  { %1164 = vmatpush1.msra.mxu0 %v2708_v13  ;;  %1888 = vmatpush3.msra.mxu1 %v2812_v62 }
 0x535   :  { %1165 = vmatprep.subr.mxu0 %v2712_v27  ;;  %1889 = vmatprep.subr.mxu1 %v3010_v0 }
 0x536   :  { %1166 = vmatpush1.msra.mxu0 %v2716_v15  ;;  %1890 = vmatpush3.msra.mxu1 %v2818_v1 }
 0x537   :  { %1167 = vmatprep.subr.mxu0 %v2720_v30  ;;  %1891 = vmatprep.subr.mxu1 %v3010_v0 }
 0x538   :  { %1168 = vmatpush1.msra.mxu0 %v2724_v17  ;;  %1892 = vmatpush3.msra.mxu1 %v2824_v57 }
 0x539   :  { %1169 = vmatprep.subr.mxu0 %v2728_v33  ;;  %1893 = vmatprep.subr.mxu1 %v3010_v0 }
 0x53a   :  { %1170 = vmatpush1.msra.mxu0 %v2829_v54  ;;  %1894 = vmatpush3.msra.mxu1 %v2832_v49 }
 0x53b   :  { %1171 = vmatprep.subr.mxu0 %v2835_v29  ;;  %1895 = vmatprep.subr.mxu1 %v3010_v0 }
 0x53c   :  { %1172 = vmatpush1.msra.mxu0 %v2839_v31  ;;  %1896 = vmatpush3.msra.mxu1 %v2842_v32 }
 0x53d   :  { %1173 = vmatprep.subr.mxu0 %v2845_v34  ;;  %1897 = vmatprep.subr.mxu1 %v3010_v0 }
 0x53e   :  { %1174 = vmatpush1.msra.mxu0 %v2849_v35  ;;  %1898 = vmatpush3.msra.mxu1 %v2852_v36 }
 0x53f   :  { %1175 = vmatprep.subr.mxu0 %v2855_v37  ;;  %1899 = vmatprep.subr.mxu1 %v3010_v0 }
 0x540   :  { %1176 = vmatpush1.msra.mxu0 %v2859_v39  ;;  %1900 = vmatpush3.msra.mxu1 %v2862_v42 }
 0x541   :  { %1177 = vmatprep.subr.mxu0 %v2865_v44  ;;  %1901 = vmatprep.subr.mxu1 %v3010_v0 }
 0x542   :  { %1178 = vmatpush1.msra.mxu0 %v2869_v45  ;;  %1902 = vmatpush3.msra.mxu1 %v2872_v46 }
 0x543   :  { %1179 = vmatprep.subr.mxu0 %v2875_v2  ;;  %1903 = vmatprep.subr.mxu1 %v3010_v0 }
 0x544   :  { %1180 = vmatpush1.msra.mxu0 %v2879_v3  ;;  %1213 = vmatprep.mubr.f32.mxu0 %v3010_v0 }
 0x545   :  { %1904 = vmatpush3.msra.mxu1 %v2883_v4  ;;  %1905 = vmatprep.mubr.msk.f32.mxu1 %vm2149_vm0, %v3010_v0 }
 0x546   :  { %1321 = vmatprep.subr.mxu0 %v2757_v28  ;;  %1908 = vmatprep.subr.mxu1 %v3010_v0 }
 0x5e5   :  { %v1043_v6 = vpop.f32.mrf.mxu0  ;;  %v1114_v7 = vpop.f32.mrf.mxu1 }
 0x5e6   :  { %v1044_v19 = vadd.f32 %v1043_v6, %v3031_v12  ;;  %v1115_v45 = vadd.f32 %v1114_v7, %v2420_v47  ;;  %v976_v6 = vld [vmem:[#allocation3 + $0x88] sm:$0xff] }
 0x5e7   :  { %v1045_v20 = vpop.f32.mrf.mxu0  ;;  %v1872_v22 = vpop.f32.mrf.mxu1 }
 0x5e8   :  { %v1118_v23 = vadd.f32 %v1044_v19, %v974_v5  ;;  %v1046_v26 = vadd.f32 %v1045_v20, %v2417_v58 }
 0x5ea   :  { %v1521_v25 = vmul.f32 -1.442695, %v1118_v23  ;;  %v1125_v38 = vadd.f32 %v1046_v26, %v975_v52 }
 0x5ec   :  { %2000 = vpow2.f32 %v1521_v25  ;;  %v1522_v4 = vmul.f32 -1.442695, %v1125_v38  ;;  %v1320_v38 = vld [vmem:[#allocation3 + $0xb8] sm:$0xff] }
 0x5ee   :  { %2002 = vpow2.f32 %v1522_v4 }
 0x5f9   :  { %v2001_v3 = vpop.eup %2000 }
 0x5fa   :  { %v1122_v28 = vadd.f32 1.0, %v2001_v3 }
 0x5fb   :  { %v2003_v2 = vpop.eup %2002 }
 0x5fc   :  { %2004 = vrcp.f32 %v1122_v28  ;;  %v1129_v46 = vadd.f32 1.0, %v2003_v2 }
 0x5fe   :  { %2006 = vrcp.f32 %v1129_v46 }
 0x609   :  { %v2005_v44 = vpop.eup %2004 }
 0x60a   :  { %v1132_v12 = vmul.f32 %v2005_v44, %v1115_v45 }
 0x60b   :  { %v2007_v19 = vpop.eup %2006 }
 0x60c   :  { %v1133_v5 = vadd.f32 %v1132_v12, %v976_v6  ;;  %v1135_v20 = vsub.f32 1.0, %v2007_v19  ;;  %v1137_v25 = vmul.f32 %v2007_v19, %v2765_v40  ;;  %v3038_v12 = vld [vmem:[#allocation13_spill] sm:$0xff] }
 0x60e   :  { %2008 = vtanh.f32 %v1133_v5 }
 0x61b   :  { %v2009_v22 = vpop.eup %2008 }
 0x61c   :  { %v1136_v23 = vmul.f32 %v2009_v22, %v1135_v20 }
 0x61e   :  { %v2894_v4 = vadd.f32 %v1137_v25, %v1136_v23 }
 0x620   :  { %1214 = vmatmul.mubr.f32.vlgmr.msra.gmra.mxu0 %v2894_v4  ;;  %1906 = vmatmul.mubr.f32.vlgmr.msra.gmra.mxu1 %v2894_v4 }
 0x621   :  { %1322 = vmatpush1.msra.mxu0 %v2652_v55  ;;  %1909 = vmatpush3.msra.mxu1 %v2770_v53  ;;  %v3039_v55 = vld [vmem:[#allocation14_spill] sm:$0xff] }
 0x622   :  { %1323 = vmatprep.subr.mxu0 %v2656_v56  ;;  %1910 = vmatprep.subr.mxu1 %v3010_v0  ;;  %v3040_v56 = vld [vmem:[#allocation17_spill] sm:$0xff] }
 0x623   :  { %1324 = vmatpush1.msra.mxu0 %v2660_v60  ;;  %1911 = vmatpush3.msra.mxu1 %v2776_v51  ;;  %v3041_v60 = vld [vmem:[#allocation15_spill] sm:$0xff] }
 0x624   :  { %1325 = vmatprep.subr.mxu0 %v2664_v59  ;;  %1912 = vmatprep.subr.mxu1 %v3010_v0  ;;  %v3042_v59 = vld [vmem:[#allocation16_spill] sm:$0xff] }
 0x625   :  { %1326 = vmatpush1.msra.mxu0 %v2668_v43  ;;  %1913 = vmatpush3.msra.mxu1 %v2782_v41  ;;  %v3043_v43 = vld [vmem:[#allocation18_spill] sm:$0xff]  ;;  %v1148_v41 = vld [vmem:[#allocation3 + $0xa0] sm:$0xff] }
 0x626   :  { %1327 = vmatprep.subr.mxu0 %v2672_v14  ;;  %1914 = vmatprep.subr.mxu1 %v3010_v0  ;;  %v1146_v14 = vld [vmem:[#allocation3 + $0x90] sm:$0xff] }
 0x627   :  { %1328 = vmatpush1.msra.mxu0 %v2676_v8  ;;  %1915 = vmatpush3.msra.mxu1 %v2788_v50 }
 0x628   :  { %1329 = vmatprep.subr.mxu0 %v2680_v16  ;;  %1916 = vmatprep.subr.mxu1 %v3010_v0 }
 0x629   :  { %1330 = vmatpush1.msra.mxu0 %v2684_v9  ;;  %1917 = vmatpush3.msra.mxu1 %v2794_v63  ;;  %v3044_v9 = vld [vmem:[#allocation19_spill] sm:$0xff] }
 0x62a   :  { %1331 = vmatprep.subr.mxu0 %v2688_v18  ;;  %1918 = vmatprep.subr.mxu1 %v3010_v0 }
 0x62b   :  { %1332 = vmatpush1.msra.mxu0 %v2692_v10  ;;  %1919 = vmatpush3.msra.mxu1 %v2800_v48 }
 0x62c   :  { %1333 = vmatprep.subr.mxu0 %v2696_v21  ;;  %1920 = vmatprep.subr.mxu1 %v3010_v0 }
 0x62d   :  { %1334 = vmatpush1.msra.mxu0 %v2700_v11  ;;  %1921 = vmatpush3.msra.mxu1 %v2806_v61 }
 0x62e   :  { %1335 = vmatprep.subr.mxu0 %v2704_v24  ;;  %1922 = vmatprep.subr.mxu1 %v3010_v0 }
 0x62f   :  { %1336 = vmatpush1.msra.mxu0 %v2708_v13  ;;  %1923 = vmatpush3.msra.mxu1 %v2812_v62 }
 0x630   :  { %1337 = vmatprep.subr.mxu0 %v2712_v27  ;;  %1924 = vmatprep.subr.mxu1 %v3010_v0  ;;  %v1147_v27 = vld [vmem:[#allocation3 + $0x98] sm:$0xff] }
 0x631   :  { %1338 = vmatpush1.msra.mxu0 %v2716_v15  ;;  %1925 = vmatpush3.msra.mxu1 %v2818_v1 }
 0x632   :  { %1339 = vmatprep.subr.mxu0 %v2720_v30  ;;  %1926 = vmatprep.subr.mxu1 %v3010_v0 }
 0x633   :  { %1340 = vmatpush1.msra.mxu0 %v2724_v17  ;;  %1927 = vmatpush3.msra.mxu1 %v2824_v57 }
 0x634   :  { %1341 = vmatprep.subr.mxu0 %v2728_v33  ;;  %1928 = vmatprep.subr.mxu1 %v3010_v0 }
 0x635   :  { %1342 = vmatpush1.msra.mxu0 %v2829_v54  ;;  %1929 = vmatpush3.msra.mxu1 %v2832_v49  ;;  %v1318_v49 = vld [vmem:[#allocation3 + $0xa8] sm:$0xff] }
 0x636   :  { %1343 = vmatprep.subr.mxu0 %v2835_v29  ;;  %1930 = vmatprep.subr.mxu1 %v3010_v0 }
 0x637   :  { %1344 = vmatpush1.msra.mxu0 %v2839_v31  ;;  %1931 = vmatpush3.msra.mxu1 %v2842_v32 }
 0x638   :  { %1345 = vmatprep.subr.mxu0 %v2845_v34  ;;  %1932 = vmatprep.subr.mxu1 %v3010_v0 }
 0x639   :  { %1346 = vmatpush1.msra.mxu0 %v2849_v35  ;;  %1933 = vmatpush3.msra.mxu1 %v2852_v36 }
 0x63a   :  { %1347 = vmatprep.subr.mxu0 %v2855_v37  ;;  %1934 = vmatprep.subr.mxu1 %v3010_v0 }
 0x63b   :  { %1348 = vmatpush1.msra.mxu0 %v2859_v39  ;;  %1935 = vmatpush3.msra.mxu1 %v2862_v42  ;;  %v1319_v42 = vld [vmem:[#allocation3 + $0xb0] sm:$0xff] }
 0x63c   :  { %1349 = vmatprep.subr.mxu0 %v3038_v12  ;;  %1936 = vmatprep.subr.mxu1 %v3010_v0 }
 0x63d   :  { %1350 = vmatpush1.msra.mxu0 %v3039_v55  ;;  %1937 = vmatpush3.msra.mxu1 %v3040_v56 }
 0x63e   :  { %1351 = vmatprep.subr.mxu0 %v3041_v60  ;;  %1938 = vmatprep.subr.mxu1 %v3010_v0 }
 0x63f   :  { %1352 = vmatpush1.msra.mxu0 %v3042_v59  ;;  %1385 = vmatprep.mubr.f32.mxu0 %v3010_v0 }
 0x640   :  { %1939 = vmatpush3.msra.mxu1 %v3043_v43  ;;  %1940 = vmatprep.mubr.msk.f32.mxu1 %vm2149_vm0, %v3010_v0 }
 0x6e0   :  { %v1215_v8 = vpop.f32.mrf.mxu0  ;;  %v1286_v16 = vpop.f32.mrf.mxu1 }
 0x6e1   :  { %v1216_v18 = vadd.f32 %v1215_v8, %v3044_v9  ;;  %v1287_v53 = vadd.f32 %v1286_v16, %v2420_v47 }
 0x6e2   :  { %v1217_v10 = vpop.f32.mrf.mxu0  ;;  %v1907_v21 = vpop.f32.mrf.mxu1 }
 0x6e3   :  { %v1290_v11 = vadd.f32 %v1216_v18, %v1146_v14  ;;  %v1218_v13 = vadd.f32 %v1217_v10, %v2417_v58 }
 0x6e5   :  { %v1523_v24 = vmul.f32 -1.442695, %v1290_v11  ;;  %v1297_v15 = vadd.f32 %v1218_v13, %v1147_v27 }
 0x6e7   :  { %2010 = vpow2.f32 %v1523_v24  ;;  %v1524_v30 = vmul.f32 -1.442695, %v1297_v15 }
 0x6e9   :  { %2012 = vpow2.f32 %v1524_v30 }
 0x6f4   :  { %v2011_v17 = vpop.eup %2010 }
 0x6f5   :  { %v1294_v33 = vadd.f32 1.0, %v2011_v17 }
 0x6f6   :  { %v2013_v0 = vpop.eup %2012 }
 0x6f7   :  { %2014 = vrcp.f32 %v1294_v33  ;;  %v1301_v40 = vadd.f32 1.0, %v2013_v0 }
 0x6f9   :  { %2016 = vrcp.f32 %v1301_v40 }
 0x704   :  { %v2015_v51 = vpop.eup %2014 }
 0x705   :  { %v1304_v50 = vmul.f32 %v2015_v51, %v1287_v53 }
 0x706   :  { %v2017_v48 = vpop.eup %2016 }
 0x707   :  { %v1305_v63 = vadd.f32 %v1304_v50, %v1148_v41  ;;  %v1307_v61 = vsub.f32 1.0, %v2017_v48  ;;  %v1309_v57 = vmul.f32 %v2017_v48, %v2894_v4 }
 0x709   :  { %2018 = vtanh.f32 %v1305_v63 }
 0x716   :  { %v2019_v62 = vpop.eup %2018 }
 0x717   :  { %v1308_v1 = vmul.f32 %v2019_v62, %v1307_v61 }
 0x719   :  { %v1310_v54 = vadd.f32 %v1309_v57, %v1308_v1 }
 0x71b   :  { %1386 = vmatmul.mubr.f32.vlgmr.msra.gmra.mxu0 %v1310_v54  ;;  %1941 = vmatmul.mubr.f32.vlgmr.msra.gmra.mxu1 %v1310_v54 }
 0x7db   :  { %v1387_v29 = vpop.f32.mrf.mxu0  ;;  %v1458_v31 = vpop.f32.mrf.mxu1 }
 0x7dc   :  { %v1388_v32 = vadd.f32 %v1387_v29, %v3044_v9  ;;  %v1459_v26 = vadd.f32 %v1458_v31, %v2420_v47 }
 0x7dd   :  { %v1389_v34 = vpop.f32.mrf.mxu0  ;;  %v1942_v35 = vpop.f32.mrf.mxu1 }
 0x7de   :  { %v1462_v36 = vadd.f32 %v1388_v32, %v1318_v49  ;;  %v1390_v39 = vadd.f32 %v1389_v34, %v2417_v58 }
 0x7e0   :  { %v1525_v37 = vmul.f32 -1.442695, %v1462_v36  ;;  %v1469_v44 = vadd.f32 %v1390_v39, %v1319_v42 }
 0x7e2   :  { %2020 = vpow2.f32 %v1525_v37  ;;  %v1526_v45 = vmul.f32 -1.442695, %v1469_v44 }
 0x7e4   :  { %2022 = vpow2.f32 %v1526_v45 }
 0x7ef   :  { %v2021_v46 = vpop.eup %2020 }
 0x7f0   :  { %v1466_v2 = vadd.f32 1.0, %v2021_v46 }
 0x7f1   :  { %v2023_v3 = vpop.eup %2022 }
 0x7f2   :  { %2024 = vrcp.f32 %v1466_v2  ;;  %v1473_v7 = vadd.f32 1.0, %v2023_v3 }
 0x7f4   :  { %2026 = vrcp.f32 %v1473_v7 }
 0x7ff   :  { %v2025_v52 = vpop.eup %2024 }
 0x800   :  { %v1476_v28 = vmul.f32 %v2025_v52, %v1459_v26 }
 0x801   :  { %v2027_v5 = vpop.eup %2026 }
 0x802   :  { %v1477_v6 = vadd.f32 %v1476_v28, %v1320_v38  ;;  %v1479_v58 = vsub.f32 1.0, %v2027_v5  ;;  %v1481_v22 = vmul.f32 %v2027_v5, %v1310_v54 }
 0x804   :  { %2028 = vtanh.f32 %v1477_v6 }
 0x811   :  { %v2029_v19 = vpop.eup %2028 }
 0x812   :  { %v1480_v20 = vmul.f32 %v2029_v19, %v1479_v58 }
 0x814   :  { %v1482_v23 = vadd.f32 %v1481_v22, %v1480_v20 }
 0x816   :  { %1494 = vst [vmem:[#allocation8] sm:$0xff] %v1482_v23 }
 0x817   :  { %2129 = shalt.err (!%p2126_p0)
}
 0x818   :  { %1504 = dma.vmem_to_hbm [thread:$0]  %s1502_s24, 128, %s2976_s3, [#allocation5]  }
 0x819   :  { %2142 = dma.done.wait [#allocation5], 128  }
 0x81a   :  { %2143 = vsyncadd [#allocation5], 4294967168 }
 0x81b   :  { %1508 = vsyncpa [#allocation4], 1 }
 0x81c   :  { %1509 = vsyncpa [#allocation7], 1 }
 0x81d   :  { %1510 = vsyncpa [#allocation5], 1 }

</bundles_post_ra>
